<compile_context>
chip_gen: v6e
topology: v6e:2x2x1
jax: 0.10.0
libtpu: 0.0.40
codegen_flags: <defaults>
</compile_context>

<pallas_src>
import functools

import jax
import jax.numpy as jnp
from jax.experimental import pallas as pl
from jax.experimental.pallas import tpu as pltpu


# ----------------------------------------------------------------------------
# Fused kernel: layernorm + linear1 + relu + linear2 on a (tile, D) row block.
# LN affine is pre-folded into w1/b1, so only 5 operands besides x.
# ----------------------------------------------------------------------------
def _transition_kernel(x_ref, w1_ref, b1_ref, w2_ref, b2_ref, o_ref):
    # ---- layernorm, one-pass stats (f32, VPU/XLU) ----
    x = x_ref[...].astype(jnp.float32)                          # (T, D)
    mu = jnp.mean(x, axis=-1, keepdims=True)
    var = jnp.mean(x * x, axis=-1, keepdims=True) - mu * mu
    var = jnp.maximum(var, 0.0)                                 # cancellation guard
    h = (x - mu) * jax.lax.rsqrt(var + 1e-5)                    # affine folded into w1/b1

    # ---- linear1 + relu (bf16 operands -> MXU, f32 accumulate) ----
    h1 = jnp.dot(h.astype(jnp.bfloat16), w1_ref[...],
                 preferred_element_type=jnp.float32) + b1_ref[...]   # (T, H)
    h1 = jnp.maximum(h1, 0.0)

    # ---- linear2 ----
    y = jnp.dot(h1.astype(jnp.bfloat16), w2_ref[...],
                preferred_element_type=jnp.float32) + b2_ref[...]    # (T, D)
    o_ref[...] = y.astype(o_ref.dtype)


def _round_up(v, m):
    return -(-v // m) * m


# ----------------------------------------------------------------------------
# Wrapper: flatten leading dims, tile rows, run one fused pallas_call.
# ----------------------------------------------------------------------------
def transition_update(x, params, *, tile_rows=2048):
    orig_shape = x.shape
    D = orig_shape[-1]
    H = params['w1'].shape[0]

    rows = 1
    for s in orig_shape[:-1]:
        rows *= s
    x2d = x.reshape(rows, D)

    # ---- row tile selection (no padding: ragged last block is Pallas-masked)
    if rows <= 8:
        tile = rows                       # block dim == full dim -> always legal
    else:
        tile = min(tile_rows, rows)
        if tile >= rows:
            # Single-block case: split so a v7x megacore gets >= 2 grid steps.
            tile = pl.cdiv(rows, 2)
        tile = max(8, _round_up(tile, 8))  # keep the (8,128) block constraint
    grid = (pl.cdiv(rows, tile),)

    # ---- weight prep (once per call, tiny arrays) ----
    # F.linear uses x @ W.T, so pre-transpose; fold the LN affine into layer 1:
    #   (h*wn + bn) @ w1.T  ==  h @ (wn[:,None] * w1.T)  +  bn @ w1.T
    w1t = params['w1'].astype(jnp.float32).T                    # (D, H)
    wn = params['wn'].astype(jnp.float32)
    bn = params['bn'].astype(jnp.float32)
    w1_eff = (wn[:, None] * w1t).astype(jnp.bfloat16)           # (D, H) bf16
    b1_eff = (params['b1'].astype(jnp.float32)
              + bn @ w1t).reshape(1, H)                         # (1, H) f32
    w2t = params['w2'].T.astype(jnp.bfloat16)                   # (H, D) bf16
    b2 = params['b2'].reshape(1, D).astype(jnp.float32)         # (1, D) f32

    const = lambda i: (0, 0)   # weights/biases: same (VMEM-resident) block
    out2d = pl.pallas_call(
        _transition_kernel,
        out_shape=jax.ShapeDtypeStruct((rows, D), x.dtype),
        grid_spec=pltpu.PrefetchScalarGridSpec(
            num_scalar_prefetch=0,
            grid=grid,
            in_specs=[
                pl.BlockSpec((tile, D), lambda i: (i, 0)),      # x rows
                pl.BlockSpec((D, H), const),                    # w1_eff (bf16)
                pl.BlockSpec((1, H), const),                    # b1_eff
                pl.BlockSpec((H, D), const),                    # w2.T (bf16)
                pl.BlockSpec((1, D), const),                    # b2
            ],
            out_specs=pl.BlockSpec((tile, D), lambda i: (i, 0)),
        ),
        compiler_params=pltpu.CompilerParams(
            dimension_semantics=("parallel",)),
    )(x2d, w1_eff, b1_eff, w2t, b2)

    return out2d.reshape(orig_shape)


# ----------------------------------------------------------------------------
# Pure-JAX f32 reference (mirrors the PyTorch `mlp` function exactly).
# ----------------------------------------------------------------------------
def transition_ref(x, params):
    hp = jax.lax.Precision.HIGHEST
    mu = jnp.mean(x, -1, keepdims=True)
    var = jnp.mean(jnp.square(x - mu), -1, keepdims=True)
    h = (x - mu) / jnp.sqrt(var + 1e-5) * params['wn'] + params['bn']
    h1 = jax.nn.relu(jnp.dot(h, params['w1'].T, precision=hp) + params['b1'])
    return jnp.dot(h1, params['w2'].T, precision=hp) + params['b2']


if __name__ == "__main__":
    B, N, D, H = 2, 16, 128, 512        # module defaults: dim=128, hidden=512
    key = jax.random.PRNGKey(0)
    ks = jax.random.split(key, 8)

    x = jax.random.normal(ks[0], (B, N, N, D), dtype=jnp.float32)

    # Deterministic synthetic parameters (same shapes/layout as the nn.Module).
    # NOTE: the module's real init zeroes w2/b1/b2 (final_init); small random
    # values keep the numerics non-trivial for validation.
    params = {
        'wn': 1.0 + 0.05 * jax.random.normal(ks[1], (D,)),
        'bn': 0.05 * jax.random.normal(ks[2], (D,)),
        'w1': 0.05 * jax.random.normal(ks[3], (H, D)),    # (out, in) like PyTorch
        'b1': 0.05 * jax.random.normal(ks[4], (H,)),
        'w2': 0.05 * jax.random.normal(ks[5], (D, H)),    # (out, in)
        'b2': 0.05 * jax.random.normal(ks[6], (D,)),
    }

    # Main shape: rows = 512 -> tile = 256, grid = (2,) (both v7x TCs busy).
    fwd = jax.jit(transition_update)
    out = jax.block_until_ready(fwd(x, params))
    ref = jax.block_until_ready(transition_ref(x, params))
    assert out.shape == (B, N, N, D)
    # bf16 MXU operands vs. HIGHEST-precision f32 reference -> loose-ish tol.
    assert jnp.allclose(out, ref, rtol=2e-2, atol=2e-2), (
        float(jnp.max(jnp.abs(out - ref))))

    # Ragged shape: rows = 121 -> tile = 64, grid = (2,), last block partial.
    # Exercises the Pallas-masked ragged block (no wrapper pad/slice anymore).
    x2 = jax.random.normal(ks[7], (1, 11, 11, D), dtype=jnp.float32)
    out2 = jax.block_until_ready(jax.jit(transition_update)(x2, params))
    ref2 = transition_ref(x2, params)
    assert out2.shape == x2.shape
    assert jnp.allclose(out2, ref2, rtol=2e-2, atol=2e-2), (
        float(jnp.max(jnp.abs(out2 - ref2))))

    # Odd tile_rows override (forces several grid steps on the main shape).
    fwd_small_tile = jax.jit(functools.partial(transition_update, tile_rows=160))
    out3 = jax.block_until_ready(fwd_small_tile(x, params))
    assert jnp.allclose(out3, ref, rtol=2e-2, atol=2e-2), (
        float(jnp.max(jnp.abs(out3 - ref))))

    print("KERNEL_OK")
</pallas_src>

<mosaic_0001>
module attributes {stable_mosaic.version = 11 : i64} {
  func.func @_transition_kernel(%arg0: i32, %arg1: memref<256x128xf32, #tpu.memory_space<vmem>>, %arg2: memref<128x512xbf16, #tpu.memory_space<vmem>>, %arg3: memref<1x512xf32, #tpu.memory_space<vmem>>, %arg4: memref<512x128xbf16, #tpu.memory_space<vmem>>, %arg5: memref<1x128xf32, #tpu.memory_space<vmem>>, %arg6: memref<256x128xf32, #tpu.memory_space<vmem>>) attributes {dimension_semantics = [#tpu.dimension_semantics<parallel>], iteration_bounds = array<i64: 2>, scalar_prefetch = 0 : i64, scratch_operands = 0 : i64, tpu.core_type = #tpu.core_type<tc>, window_params = [{transform_indices = @transform_0, window_bounds = array<i64: 256, 128>}, {pipeline_mode = #tpu.pipeline_mode<synchronous>, transform_indices = @transform_1, window_bounds = array<i64: 128, 512>}, {pipeline_mode = #tpu.pipeline_mode<synchronous>, transform_indices = @transform_2, window_bounds = array<i64: 1, 512>}, {pipeline_mode = #tpu.pipeline_mode<synchronous>, transform_indices = @transform_3, window_bounds = array<i64: 512, 128>}, {pipeline_mode = #tpu.pipeline_mode<synchronous>, transform_indices = @transform_4, window_bounds = array<i64: 1, 128>}, {transform_indices = @transform_5, window_bounds = array<i64: 256, 128>}]} {
    %c0 = arith.constant 0 : index
    %c0_0 = arith.constant 0 : index
    %0 = vector.load %arg1[%c0, %c0_0] : memref<256x128xf32, #tpu.memory_space<vmem>>, vector<256x128xf32>
    %cst = arith.constant dense<0.000000e+00> : vector<256xf32>
    %1 = vector.multi_reduction <add>, %0, %cst [1] : vector<256x128xf32> to vector<256xf32>
    %2 = vector.shape_cast %1 : vector<256xf32> to vector<256x1xf32>
    %cst_1 = arith.constant 1.280000e+02 : f32
    %3 = vector.broadcast %cst_1 : f32 to vector<256x1xf32>
    %4 = arith.divf %2, %3 : vector<256x1xf32>
    %5 = arith.mulf %0, %0 : vector<256x128xf32>
    %cst_2 = arith.constant dense<0.000000e+00> : vector<256xf32>
    %6 = vector.multi_reduction <add>, %5, %cst_2 [1] : vector<256x128xf32> to vector<256xf32>
    %7 = vector.shape_cast %6 : vector<256xf32> to vector<256x1xf32>
    %cst_3 = arith.constant 1.280000e+02 : f32
    %8 = vector.broadcast %cst_3 : f32 to vector<256x1xf32>
    %9 = arith.divf %7, %8 : vector<256x1xf32>
    %10 = arith.mulf %4, %4 : vector<256x1xf32>
    %11 = arith.subf %9, %10 : vector<256x1xf32>
    %cst_4 = arith.constant 0.000000e+00 : f32
    %12 = vector.broadcast %cst_4 : f32 to vector<256x1xf32>
    %13 = arith.maximumf %11, %12 : vector<256x1xf32>
    %14 = vector.broadcast %4 : vector<256x1xf32> to vector<256x128xf32>
    %15 = arith.subf %0, %14 : vector<256x128xf32>
    %cst_5 = arith.constant 9.99999974E-6 : f32
    %16 = vector.broadcast %cst_5 : f32 to vector<256x1xf32>
    %17 = arith.addf %13, %16 : vector<256x1xf32>
    %18 = math.rsqrt %17 : vector<256x1xf32>
    %19 = vector.broadcast %18 : vector<256x1xf32> to vector<256x128xf32>
    %20 = arith.mulf %15, %19 : vector<256x128xf32>
    %21 = arith.truncf %20 : vector<256x128xf32> to vector<256x128xbf16>
    %c0_6 = arith.constant 0 : index
    %c0_7 = arith.constant 0 : index
    %22 = vector.load %arg2[%c0_6, %c0_7] : memref<128x512xbf16, #tpu.memory_space<vmem>>, vector<128x512xbf16>
    %cst_8 = arith.constant dense<0.000000e+00> : vector<256x512xf32>
    %23 = tpu.matmul %21, %22, %cst_8 {dimension_numbers = #tpu.dot_dimension_numbers<[1], [0], [0], [1], [0, 0, 1, 1], [], []>} : vector<256x128xbf16>, vector<128x512xbf16>, vector<256x512xf32> -> vector<256x512xf32>
    %c0_9 = arith.constant 0 : index
    %c0_10 = arith.constant 0 : index
    %24 = vector.load %arg3[%c0_9, %c0_10] : memref<1x512xf32, #tpu.memory_space<vmem>>, vector<1x512xf32>
    %25 = vector.broadcast %24 : vector<1x512xf32> to vector<256x512xf32>
    %26 = arith.addf %23, %25 : vector<256x512xf32>
    %cst_11 = arith.constant 0.000000e+00 : f32
    %27 = vector.broadcast %cst_11 : f32 to vector<256x512xf32>
    %28 = arith.maximumf %26, %27 : vector<256x512xf32>
    %29 = arith.truncf %28 : vector<256x512xf32> to vector<256x512xbf16>
    %c0_12 = arith.constant 0 : index
    %c0_13 = arith.constant 0 : index
    %30 = vector.load %arg4[%c0_12, %c0_13] : memref<512x128xbf16, #tpu.memory_space<vmem>>, vector<512x128xbf16>
    %cst_14 = arith.constant dense<0.000000e+00> : vector<256x128xf32>
    %31 = tpu.matmul %29, %30, %cst_14 {dimension_numbers = #tpu.dot_dimension_numbers<[1], [0], [0], [1], [0, 0, 1, 1], [], []>} : vector<256x512xbf16>, vector<512x128xbf16>, vector<256x128xf32> -> vector<256x128xf32>
    %c0_15 = arith.constant 0 : index
    %c0_16 = arith.constant 0 : index
    %32 = vector.load %arg5[%c0_15, %c0_16] : memref<1x128xf32, #tpu.memory_space<vmem>>, vector<1x128xf32>
    %33 = vector.broadcast %32 : vector<1x128xf32> to vector<256x128xf32>
    %34 = arith.addf %31, %33 : vector<256x128xf32>
    %c0_17 = arith.constant 0 : index
    %c0_18 = arith.constant 0 : index
    %35 = vector.load %arg6[%c0_17, %c0_18] : memref<256x128xf32, #tpu.memory_space<vmem>>, vector<256x128xf32>
    tpu.vector_store %arg6[%c0_17, %c0_18], %34 {strides = array<i32>} : memref<256x128xf32, #tpu.memory_space<vmem>>, vector<256x128xf32>,
    return
  }
  func.func @transform_0(%arg0: i32) -> (i32, i32) {
    %c0_i32 = arith.constant 0 : i32
    %c0_i32_0 = arith.constant 0 : i32
    return %arg0, %c0_i32 : i32, i32
  }
  func.func @transform_1(%arg0: i32) -> (i32, i32) {
    %c0_i32 = arith.constant 0 : i32
    %c0_i32_0 = arith.constant 0 : i32
    %c0_i32_1 = arith.constant 0 : i32
    return %c0_i32, %c0_i32_0 : i32, i32
  }
  func.func @transform_2(%arg0: i32) -> (i32, i32) {
    %c0_i32 = arith.constant 0 : i32
    %c0_i32_0 = arith.constant 0 : i32
    %c0_i32_1 = arith.constant 0 : i32
    return %c0_i32, %c0_i32_0 : i32, i32
  }
  func.func @transform_3(%arg0: i32) -> (i32, i32) {
    %c0_i32 = arith.constant 0 : i32
    %c0_i32_0 = arith.constant 0 : i32
    %c0_i32_1 = arith.constant 0 : i32
    return %c0_i32, %c0_i32_0 : i32, i32
  }
  func.func @transform_4(%arg0: i32) -> (i32, i32) {
    %c0_i32 = arith.constant 0 : i32
    %c0_i32_0 = arith.constant 0 : i32
    %c0_i32_1 = arith.constant 0 : i32
    return %c0_i32, %c0_i32_0 : i32, i32
  }
  func.func @transform_5(%arg0: i32) -> (i32, i32) {
    %c0_i32 = arith.constant 0 : i32
    %c0_i32_0 = arith.constant 0 : i32
    return %arg0, %c0_i32 : i32, i32
  }
}

</mosaic_0001>

<bundles_post_ra>
// kernel: transition_update.1
= control target key start
LH: loop header
LB: loop body
LE: loop exit
PB: predicated region body
PF: predicated region fallthrough
CT: control target
= control target key end

     0   :  { %10 = vsyncpa [#allocation3], 0  ;;  %s3680_s0 = inlined_call_operand.vmem [shape: f32[512,128], index: 0, kind: input, shape index: {}]   ;;  %s3681_s1 = inlined_call_operand.vmem [shape: bf16[128,512], index: 1, kind: input, shape index: {}]   ;;  %s3682_s2 = inlined_call_operand.vmem [shape: f32[1,512], index: 2, kind: input, shape index: {}]   ;;  %s3683_s3 = inlined_call_operand.vmem [shape: bf16[512,128], index: 3, kind: input, shape index: {}]   ;;  %s3684_s4 = inlined_call_operand.vmem [shape: f32[1,128], index: 4, kind: input, shape index: {}]   ;;  %s3685_s5 = inlined_call_operand.hbm [shape: f32[512,128], index: 5, kind: output, shape index: {}]  }
   0x1   :  { %12 = vsyncpa [#allocation3 + $0x1], 0  ;;  %s2799_s18 = smov 0   ;;  %s2801_s19 = smov 0  }
   0x2   :  { %s2803_s20 = smov 0   ;;  %s2805_s21 = smov 0  }
   0x3 LB: > { %s2820_s22 = sadd.s32 4294967295, %s2763_s21   ;;  %s2209_s23 = sadd.s32 4294967294, %s2763_s21   ;;  %s2763_s21 = sphi %s2805_s21, %s3691_s21   ;;  %s2759_s20 = sphi %s2803_s20, %s3690_s20   ;;  %s2755_s19 = sphi %s2801_s19, %s3689_s19   ;;  %s2751_s18 = sphi %s2799_s18, %s3688_s18  }
   0x4   : > { %s2824_s24 = sadd.s32 1, %s2763_s21   ;;  %s135_s25 = sadd.s32 1, %s2759_s20 }
   0x5   : > { %s132_s26 = ssub.s32 %s2763_s21, %s2824_s24  ;;  %p145_p0 = scmp.ne.s32.totalorder %s2759_s20, %s2755_s19 }
   0x6   : > { %p133_p1 = scmp.eq.s32.totalorder %s132_s26, 0  ;;  %p146_p2 = scmp.eq.s32.totalorder %s2820_s22, 1 }
   0x7   : > { %p151_p3 = scmp.ne.s32.totalorder %s2755_s19, %s2751_s18  ;;  %p152_p4 = scmp.eq.s32.totalorder %s2209_s23, 1 }
   0x8   : > { %s2835_s27 = scalar_select %p133_p1, %s2759_s20, %s135_s25  }
   0x9   : > { %p2837_p5 = por %p146_p2, %p145_p0  ;;  %p2841_p6 = por %p152_p4, %p151_p3 }
   0xa   : > { %p2212_p7 = scmp.ge.s32.totalorder %s2763_s21, 1  ;;  %p191_p8 = scmp.lt.s32.totalorder %s2763_s21, 3 }
   0xc   : > { %p192_p9 = pnand %p2212_p7, %p191_p8 }
   0xd   : > { %s2214_s30 = sshll.u32 (!%p192_p9), %s2820_s22, 5  ;;  %s2286_s8 = sshll.u32 (!%p192_p9), %s2820_s22, 12 }
   0xe   : > { %195 = sbr.rel (%p192_p9) target bundleno = 738 (0x2e2), region = 40  ;;  %p220_p10 = scmp.lt.s32.totalorder (!%p192_p9), %s2214_s30, 63 }
   0xf   : > { %s3633_s13 = scalar_lea.hbm (!%p192_p9), %s3685_s5, %s2286_s8  ;;  %s2766_s15 = smov (!%p192_p9), [#allocation2]  }
  0x10   : > { %s2707_s16 = sshll.u32 (!%p192_p9), %s2766_s15, 4  ;;  %s2708_s16 = int_to_ptr.vmem [resolvable:$false] %s2707_s16 }
  0x11   : > { %s2709_s17 = scalar_lea.vmem (!%p192_p9), %s2708_s16, 8192 }
  0x13   : > { %s3693_s30 = smov (!%p220_p10, %s2214_s30), 63  ;;  %v2553_v7 = vld [vmem:[%s3681_s1 + $0xe4] ss:$16 sps:$4 sm:$0xff]   ;;  %v2555_v9 = vld [vmem:[%s3681_s1 + $0xec] ss:$16 sps:$4 sm:$0xff]   ;;  %v2765_v56 = vmov 0  }
  0x14   : > { %s2215_s6 = sshll.u32 %s3693_s30, 3  ;;  %v2557_v10 = vld [vmem:[%s3681_s1 + $0xe0] ss:$16 sps:$4 sm:$0xff]   ;;  %v2558_v11 = vld [vmem:[%s3681_s1 + $0xe8] ss:$16 sps:$4 sm:$0xff]   ;;  %938 = vmatprep.subr.bf16.mxu0 %v2553_v7  ;;  %1131 = vmatprep.subr.bf16.mxu1 %v2555_v9 }
  0x15   : > { %s2851_s9 = scalar_lea.vmem %s3680_s0, %s2215_s6  ;;  %v2559_v13 = vld [vmem:[%s3681_s1 + $0xc4] ss:$16 sps:$4 sm:$0xff]   ;;  %v2561_v14 = vld [vmem:[%s3681_s1 + $0xcc] ss:$16 sps:$4 sm:$0xff]   ;;  %939 = vmatpush1.bf16.msra.mxu0 %v2557_v10  ;;  %1132 = vmatpush1.bf16.msra.mxu1 %v2558_v11  ;;  %v2563_v16 = vld [vmem:[%s3681_s1 + $0xc0] ss:$16 sps:$4 sm:$0xff]  }
  0x16   : > { %v2854_v0 = vld [vmem:[%s2851_s9] sm:$0xff]  ;;  %v2857_v1 = vld [vmem:[%s2851_s9 + $0x8] sm:$0xff]  ;;  %v2866_v4 = vld [vmem:[%s2851_s9 + $0x10] sm:$0xff]  ;;  %940 = vmatprep.subr.bf16.mxu0 %v2559_v13  ;;  %1133 = vmatprep.subr.bf16.mxu1 %v2561_v14 }
  0x17   : > { %259 = vadd.xlane.f32.xlu0 %v2854_v0  ;;  %v356_v2 = vmul.f32 %v2854_v0, %v2854_v0  ;;  %v357_v3 = vmul.f32 %v2857_v1, %v2857_v1  ;;  %v2869_v5 = vld [vmem:[%s2851_s9 + $0x18] sm:$0xff]  ;;  %v358_v6 = vmul.f32 %v2866_v4, %v2866_v4  ;;  %v2890_v12 = vld [vmem:[%s2851_s9 + $0x20] sm:$0xff]  ;;  %v2899_v15 = vld [vmem:[%s2851_s9 + $0x28] sm:$0xff]  ;;  %970 = vmatprep.mubr.bf16.mxu0 %v2765_v56 }
  0x18   : > { %v359_v8 = vmul.f32 %v2869_v5, %v2869_v5  ;;  %v2564_v17 = vld [vmem:[%s3681_s1 + $0xc8] ss:$16 sps:$4 sm:$0xff]   ;;  %v360_v18 = vmul.f32 %v2890_v12, %v2890_v12  ;;  %v2565_v19 = vld [vmem:[%s3681_s1 + $0xa4] ss:$16 sps:$4 sm:$0xff]   ;;  %v2567_v20 = vld [vmem:[%s3681_s1 + $0xac] ss:$16 sps:$4 sm:$0xff]   ;;  %v361_v23 = vmul.f32 %v2899_v15, %v2899_v15  ;;  %1163 = vmatprep.mubr.bf16.mxu1 %v2765_v56 }
  0x19   : > { %388 = vadd.xlane.f32.xlu1 %v356_v2  ;;  %941 = vmatpush1.bf16.msra.mxu0 %v2563_v16  ;;  %v2569_v21 = vld [vmem:[%s3681_s1 + $0xa0] ss:$16 sps:$4 sm:$0xff]   ;;  %v2570_v22 = vld [vmem:[%s3681_s1 + $0xa8] ss:$16 sps:$4 sm:$0xff]   ;;  %v2571_v26 = vld [vmem:[%s3681_s1 + $0x84] ss:$16 sps:$4 sm:$0xff]  }
  0x1a   : > { %1134 = vmatpush1.bf16.msra.mxu1 %v2564_v17  ;;  %942 = vmatprep.subr.bf16.mxu0 %v2565_v19  ;;  %v2926_v24 = vld [vmem:[%s2851_s9 + $0x30] sm:$0xff]  ;;  %v2929_v25 = vld [vmem:[%s2851_s9 + $0x38] sm:$0xff]  ;;  %v2962_v36 = vld [vmem:[%s2851_s9 + $0x40] sm:$0xff] }
  0x1b   : > { %261 = vadd.xlane.f32.xlu0 %v2857_v1  ;;  %1135 = vmatprep.subr.bf16.mxu1 %v2567_v20  ;;  %v2573_v27 = vld [vmem:[%s3681_s1 + $0x8c] ss:$16 sps:$4 sm:$0xff]   ;;  %v2575_v28 = vld [vmem:[%s3681_s1 + $0x80] ss:$16 sps:$4 sm:$0xff]   ;;  %v2576_v29 = vld [vmem:[%s3681_s1 + $0x88] ss:$16 sps:$4 sm:$0xff]   ;;  %v362_v30 = vmul.f32 %v2926_v24, %v2926_v24  ;;  %v363_v33 = vmul.f32 %v2929_v25, %v2929_v25  ;;  %v364_v42 = vmul.f32 %v2962_v36, %v2962_v36 }
  0x1c   : > { %v2577_v31 = vld [vmem:[%s3681_s1 + $0x64] ss:$16 sps:$4 sm:$0xff]   ;;  %v2579_v32 = vld [vmem:[%s3681_s1 + $0x6c] ss:$16 sps:$4 sm:$0xff]   ;;  %v2581_v34 = vld [vmem:[%s3681_s1 + $0x60] ss:$16 sps:$4 sm:$0xff]  }
  0x1d   : > { %390 = vadd.xlane.f32.xlu1 %v357_v3  ;;  %943 = vmatpush1.bf16.msra.mxu0 %v2569_v21  ;;  %v2582_v35 = vld [vmem:[%s3681_s1 + $0x68] ss:$16 sps:$4 sm:$0xff]   ;;  %v2583_v38 = vld [vmem:[%s3681_s1 + $0x44] ss:$16 sps:$4 sm:$0xff]   ;;  %v2585_v39 = vld [vmem:[%s3681_s1 + $0x4c] ss:$16 sps:$4 sm:$0xff]  }
  0x1e   : > { %1136 = vmatpush1.bf16.msra.mxu1 %v2570_v22  ;;  %944 = vmatprep.subr.bf16.mxu0 %v2571_v26  ;;  %v2965_v37 = vld [vmem:[%s2851_s9 + $0x48] sm:$0xff]  ;;  %v2587_v40 = vld [vmem:[%s3681_s1 + $0x40] ss:$16 sps:$4 sm:$0xff]   ;;  %v2589_v43 = vld [vmem:[%s3681_s1 + $0x24] ss:$16 sps:$4 sm:$0xff]  }
  0x1f   : > { %263 = vadd.xlane.f32.xlu0 %v2866_v4  ;;  %1137 = vmatprep.subr.bf16.mxu1 %v2573_v27  ;;  %v2588_v41 = vld [vmem:[%s3681_s1 + $0x48] ss:$16 sps:$4 sm:$0xff]   ;;  %v2591_v44 = vld [vmem:[%s3681_s1 + $0x2c] ss:$16 sps:$4 sm:$0xff]   ;;  %v365_v45 = vmul.f32 %v2965_v37, %v2965_v37  ;;  %v2593_v46 = vld [vmem:[%s3681_s1 + $0x20] ss:$16 sps:$4 sm:$0xff]  }
  0x20   : > { %v2594_v47 = vld [vmem:[%s3681_s1 + $0x28] ss:$16 sps:$4 sm:$0xff]   ;;  %v2998_v48 = vld [vmem:[%s2851_s9 + $0x50] sm:$0xff]  ;;  %v2597_v51 = vld [vmem:[%s3681_s1 + $0xc] ss:$16 sps:$4 sm:$0xff]  }
  0x21   : > { %265 = vadd.xlane.f32.xlu1 %v2869_v5  ;;  %945 = vmatpush1.bf16.msra.mxu0 %v2575_v28  ;;  %v3001_v49 = vld [vmem:[%s2851_s9 + $0x58] sm:$0xff]  ;;  %v2595_v50 = vld [vmem:[%s3681_s1 + $0x4] ss:$16 sps:$4 sm:$0xff]   ;;  %v2599_v52 = vld [vmem:[%s3681_s1] ss:$16 sps:$4 sm:$0xff]   ;;  %v366_v54 = vmul.f32 %v2998_v48, %v2998_v48 }
  0x22   : > { %1138 = vmatpush1.bf16.msra.mxu1 %v2576_v29  ;;  %946 = vmatprep.subr.bf16.mxu0 %v2577_v31  ;;  %v2600_v53 = vld [vmem:[%s3681_s1 + $0x8] ss:$16 sps:$4 sm:$0xff]   ;;  %v367_v55 = vmul.f32 %v3001_v49, %v3001_v49  ;;  %v3024_v57 = vld [vmem:[%s2851_s9 + $0x60] sm:$0xff]  ;;  %v3036_v61 = vld [vmem:[%s2851_s9 + $0x70] sm:$0xff] }
  0x23   : > { %392 = vadd.xlane.f32.xlu0 %v358_v6  ;;  %1139 = vmatprep.subr.bf16.mxu1 %v2579_v32  ;;  %v3027_v58 = vld [vmem:[%s2851_s9 + $0x68] sm:$0xff]  ;;  %v368_v59 = vmul.f32 %v3024_v57, %v3024_v57  ;;  %v3039_v62 = vld [vmem:[%s2851_s9 + $0x78] sm:$0xff]  ;;  %v370_v63 = vmul.f32 %v3036_v61, %v3036_v61  ;;  %v3048_v3 = vld [vmem:[%s2851_s9 + $0x80] sm:$0xff] }
  0x24   : > { %v369_v60 = vmul.f32 %v3027_v58, %v3027_v58  ;;  %v371_v2 = vmul.f32 %v3039_v62, %v3039_v62  ;;  %v3051_v6 = vld [vmem:[%s2851_s9 + $0x88] sm:$0xff]  ;;  %v372_v7 = vmul.f32 %v3048_v3, %v3048_v3  ;;  %v3060_v9 = vld [vmem:[%s2851_s9 + $0x90] sm:$0xff]  ;;  %v3063_v10 = vld [vmem:[%s2851_s9 + $0x98] sm:$0xff] }
  0x25   : > { %394 = vadd.xlane.f32.xlu1 %v359_v8  ;;  %947 = vmatpush1.bf16.msra.mxu0 %v2581_v34  ;;  %v373_v8 = vmul.f32 %v3051_v6, %v3051_v6  ;;  %v374_v11 = vmul.f32 %v3060_v9, %v3060_v9  ;;  %v375_v13 = vmul.f32 %v3063_v10, %v3063_v10  ;;  %v3072_v14 = vld [vmem:[%s2851_s9 + $0xa0] sm:$0xff]  ;;  %v3075_v16 = vld [vmem:[%s2851_s9 + $0xa8] sm:$0xff]  ;;  %v3084_v19 = vld [vmem:[%s2851_s9 + $0xb0] sm:$0xff] }
  0x26   : > { %1140 = vmatpush1.bf16.msra.mxu1 %v2582_v35  ;;  %948 = vmatprep.subr.bf16.mxu0 %v2583_v38  ;;  %v376_v17 = vmul.f32 %v3072_v14, %v3072_v14  ;;  %v3087_v20 = vld [vmem:[%s2851_s9 + $0xb8] sm:$0xff]  ;;  %v378_v21 = vmul.f32 %v3084_v19, %v3084_v19  ;;  %v3099_v26 = vld [vmem:[%s2851_s9 + $0xc8] sm:$0xff]  ;;  %v253_v29 = vld [vmem:[%s2851_s9 + $0xd0] sm:$0xff] }
  0x27   : > { %267 = vadd.xlane.f32.xlu0 %v2890_v12  ;;  %1141 = vmatprep.subr.bf16.mxu1 %v2585_v39  ;;  %v379_v22 = vmul.f32 %v3087_v20, %v3087_v20  ;;  %v381_v28 = vmul.f32 %v3099_v26, %v3099_v26  ;;  %v382_v31 = vmul.f32 %v253_v29, %v253_v29  ;;  %v256_v34 = vld [vmem:[%s2851_s9 + $0xe8] sm:$0xff]  ;;  %v257_v39 = vld [vmem:[%s2851_s9 + $0xf0] sm:$0xff] }
  0x28   : > { %v385_v38 = vmul.f32 %v256_v34, %v256_v34 }
  0x29   : > { %269 = vadd.xlane.f32.xlu1 %v2899_v15  ;;  %949 = vmatpush1.bf16.msra.mxu0 %v2587_v40  ;;  %v258_v40 = vld [vmem:[%s2851_s9 + $0xf8] sm:$0xff] }
  0x2a   : > { %1142 = vmatpush1.bf16.msra.mxu1 %v2588_v41  ;;  %950 = vmatprep.subr.bf16.mxu0 %v2589_v43  ;;  %v386_v41 = vmul.f32 %v257_v39, %v257_v39  ;;  %v2601_v43 = vld [vmem:[%s3683_s3 + $0x78] sm:$0xff]  }
  0x2b   : > { %396 = vadd.xlane.f32.xlu0 %v360_v18  ;;  %1143 = vmatprep.subr.bf16.mxu1 %v2591_v44  ;;  %v377_v18 = vmul.f32 %v3075_v16, %v3075_v16  ;;  %v2603_v44 = vld [vmem:[%s3683_s3 + $0xf8] sm:$0xff]  }
  0x2d   : > { %398 = vadd.xlane.f32.xlu1 %v361_v23  ;;  %951 = vmatpush1.bf16.msra.mxu0 %v2593_v46  ;;  %v3096_v23 = vld [vmem:[%s2851_s9 + $0xc0] sm:$0xff] }
  0x2e   : > { %1144 = vmatpush1.bf16.msra.mxu1 %v2594_v47  ;;  %952 = vmatprep.subr.bf16.mxu0 %v2595_v50  ;;  %v380_v27 = vmul.f32 %v3096_v23, %v3096_v23 }
  0x2f   : > { %271 = vadd.xlane.f32.xlu0 %v2926_v24  ;;  %1145 = vmatprep.subr.bf16.mxu1 %v2597_v51 }
  0x31   : > { %273 = vadd.xlane.f32.xlu1 %v2929_v25  ;;  %953 = vmatpush1.bf16.msra.mxu0 %v2599_v52 }
  0x32   : > { %1146 = vmatpush1.bf16.msra.mxu1 %v2600_v53  ;;  %2287 = vmatprep.subr.bf16.mxu0 %v2601_v43 }
  0x33   : > { %400 = vadd.xlane.f32.xlu0 %v362_v30  ;;  %v254_v30 = vld [vmem:[%s2851_s9 + $0xd8] sm:$0xff]  ;;  %2399 = vmatprep.subr.bf16.mxu1 %v2603_v44 }
  0x34   : > { %v383_v32 = vmul.f32 %v254_v30, %v254_v30 }
  0x35   : > { %402 = vadd.xlane.f32.xlu1 %v363_v33  ;;  %v255_v33 = vld [vmem:[%s2851_s9 + $0xe0] sm:$0xff] }
  0x36   : > { %v384_v35 = vmul.f32 %v255_v33, %v255_v33 }
  0x37   : > { %275 = vadd.xlane.f32.xlu0 %v2962_v36 }
  0x39   : > { %277 = vadd.xlane.f32.xlu1 %v2965_v37 }
  0x3b   : > { %404 = vadd.xlane.f32.xlu0 %v364_v42  ;;  %v387_v42 = vmul.f32 %v258_v40, %v258_v40 }
  0x3d   : > { %406 = vadd.xlane.f32.xlu1 %v365_v45 }
  0x3f   : > { %279 = vadd.xlane.f32.xlu0 %v2998_v48 }
  0x41   : > { %281 = vadd.xlane.f32.xlu1 %v3001_v49 }
  0x43   : > { %408 = vadd.xlane.f32.xlu0 %v366_v54 }
  0x45   : > { %410 = vadd.xlane.f32.xlu1 %v367_v55 }
  0x47   : > { %283 = vadd.xlane.f32.xlu0 %v3024_v57 }
  0x49   : > { %285 = vadd.xlane.f32.xlu1 %v3027_v58 }
  0x4b   : > { %412 = vadd.xlane.f32.xlu0 %v368_v59 }
  0x4d   : > { %414 = vadd.xlane.f32.xlu1 %v369_v60 }
  0x4f   : > { %287 = vadd.xlane.f32.xlu0 %v3036_v61 }
  0x51   : > { %289 = vadd.xlane.f32.xlu1 %v3039_v62 }
  0x53   : > { %416 = vadd.xlane.f32.xlu0 %v370_v63 }
  0x55   : > { %418 = vadd.xlane.f32.xlu1 %v371_v2 }
  0x57   : > { %291 = vadd.xlane.f32.xlu0 %v3048_v3 }
  0x59   : > { %293 = vadd.xlane.f32.xlu1 %v3051_v6 }
  0x5b   : > { %420 = vadd.xlane.f32.xlu0 %v372_v7 }
  0x5d   : > { %422 = vadd.xlane.f32.xlu1 %v373_v8 }
  0x5f   : > { %295 = vadd.xlane.f32.xlu0 %v3060_v9 }
  0x61   : > { %297 = vadd.xlane.f32.xlu1 %v3063_v10 }
  0x63   : > { %424 = vadd.xlane.f32.xlu0 %v374_v11 }
  0x65   : > { %426 = vadd.xlane.f32.xlu1 %v375_v13 }
  0x67   : > { %299 = vadd.xlane.f32.xlu0 %v3072_v14 }
  0x69   : > { %301 = vadd.xlane.f32.xlu1 %v3075_v16 }
  0x6b   : > { %428 = vadd.xlane.f32.xlu0 %v376_v17 }
  0x6d   : > { %430 = vadd.xlane.f32.xlu1 %v377_v18 }
  0x6f   : > { %303 = vadd.xlane.f32.xlu0 %v3084_v19 }
  0x71   : > { %305 = vadd.xlane.f32.xlu1 %v3087_v20 }
  0x73   : > { %432 = vadd.xlane.f32.xlu0 %v378_v21 }
  0x75   : > { %434 = vadd.xlane.f32.xlu1 %v379_v22 }
  0x77   : > { %307 = vadd.xlane.f32.xlu0 %v3096_v23 }
  0x79   : > { %309 = vadd.xlane.f32.xlu1 %v3099_v26 }
  0x7b   : > { %436 = vadd.xlane.f32.xlu0 %v380_v27 }
  0x7d   : > { %438 = vadd.xlane.f32.xlu1 %v381_v28 }
  0x7f   : > { %311 = vadd.xlane.f32.xlu0 %v253_v29 }
  0x81   : > { %313 = vadd.xlane.f32.xlu1 %v254_v30 }
  0x83   : > { %440 = vadd.xlane.f32.xlu0 %v382_v31 }
  0x85   : > { %442 = vadd.xlane.f32.xlu1 %v383_v32 }
  0x87   : > { %315 = vadd.xlane.f32.xlu0 %v255_v33 }
  0x89   : > { %317 = vadd.xlane.f32.xlu1 %v256_v34 }
  0x8b   : > { %444 = vadd.xlane.f32.xlu0 %v384_v35 }
  0x8d   : > { %446 = vadd.xlane.f32.xlu1 %v385_v38 }
  0x8f   : > { %319 = vadd.xlane.f32.xlu0 %v257_v39 }
  0x91   : > { %321 = vadd.xlane.f32.xlu1 %v258_v40 }
  0x93   : > { %448 = vadd.xlane.f32.xlu0 %v386_v41 }
  0x95   : > { %450 = vadd.xlane.f32.xlu1 %v387_v42 }
  0xa0   : > { %v260_v45 = vpop.xlane.xlu0 %259 }
  0xa1   : > { %v324_v46 = vmul.f32 0.0078125, %v260_v45 }
  0xa2   : > { %v389_v47 = vpop.xlane.xlu1 %388 }
  0xa3   : > { %v484_v50 = vmul.f32 %v324_v46, %v324_v46  ;;  %v452_v51 = vmul.f32 0.0078125, %v389_v47 }
  0xa4   : > { %v262_v52 = vpop.xlane.xlu0 %261 }
  0xa5   : > { %v516_v53 = vsub.f32 %v452_v51, %v484_v50  ;;  %v325_v54 = vmul.f32 0.0078125, %v262_v52 }
  0xa6   : > { %v391_v55 = vpop.xlane.xlu1 %390 }
  0xa7   : > { %v548_v59 = vmax.f32 %v516_v53, 0.0  ;;  %v485_v60 = vmul.f32 %v325_v54, %v325_v54  ;;  %v453_v63 = vmul.f32 0.0078125, %v391_v55 }
  0xa8   : > { %v264_v2 = vpop.xlane.xlu0 %263 }
  0xa9   : > { %v612_v7 = vadd.f32 1e-05, %v548_v59  ;;  %v517_v8 = vsub.f32 %v453_v63, %v485_v60  ;;  %v3119_v11 = vmul.f32 0.0078125, %v264_v2 }
  0xaa   : > { %v266_v13 = vpop.xlane.xlu1 %265 }
  0xab   : > { %v549_v17 = vmax.f32 %v517_v8, 0.0  ;;  %v486_v18 = vmul.f32 %v3119_v11, %v3119_v11  ;;  %2633 = vrsqrt.f32 %v612_v7  ;;  %v3123_v21 = vmul.f32 0.0078125, %v266_v13 }
  0xac   : > { %v393_v22 = vpop.xlane.xlu0 %392  ;;  %v580_v7 = vsub.f32 %v2854_v0, %v324_v46  ;;  %v581_v13 = vsub.f32 %v2857_v1, %v325_v54 }
  0xad   : > { %v613_v27 = vadd.f32 1e-05, %v549_v17  ;;  %v454_v28 = vmul.f32 0.0078125, %v393_v22  ;;  %v487_v30 = vmul.f32 %v3123_v21, %v3123_v21 }
  0xae   : > { %v395_v29 = vpop.xlane.xlu1 %394 }
  0xaf   : > { %2635 = vrsqrt.f32 %v613_v27  ;;  %v518_v31 = vsub.f32 %v454_v28, %v486_v18  ;;  %v455_v32 = vmul.f32 0.0078125, %v395_v29 }
  0xb0   : > { %v268_v33 = vpop.xlane.xlu0 %267 }
  0xb1   : > { %v550_v34 = vmax.f32 %v518_v31, 0.0  ;;  %v519_v35 = vsub.f32 %v455_v32, %v487_v30  ;;  %v3127_v38 = vmul.f32 0.0078125, %v268_v33 }
  0xb2   : > { %v270_v39 = vpop.xlane.xlu1 %269 }
  0xb3   : > { %v614_v40 = vadd.f32 1e-05, %v550_v34  ;;  %v551_v41 = vmax.f32 %v519_v35, 0.0  ;;  %v488_v42 = vmul.f32 %v3127_v38, %v3127_v38  ;;  %v3131_v43 = vmul.f32 0.0078125, %v270_v39  ;;  %v2602_v35 = vld [vmem:[%s3683_s3 + $0x38] sm:$0xff]  }
  0xb4   : > { %v397_v44 = vpop.xlane.xlu0 %396  ;;  %v2604_v39 = vld [vmem:[%s3683_s3 + $0xb8] sm:$0xff]  }
  0xb5   : > { %2637 = vrsqrt.f32 %v614_v40  ;;  %v615_v45 = vadd.f32 1e-05, %v551_v41  ;;  %v456_v47 = vmul.f32 0.0078125, %v397_v44  ;;  %v489_v51 = vmul.f32 %v3131_v43, %v3131_v43  ;;  %v2605_v41 = vld [vmem:[%s3683_s3 + $0x70] sm:$0xff]  }
  0xb6   : > { %v399_v50 = vpop.xlane.xlu1 %398 }
  0xb7   : > { %2639 = vrsqrt.f32 %v615_v45  ;;  %v520_v52 = vsub.f32 %v456_v47, %v488_v42  ;;  %v457_v53 = vmul.f32 0.0078125, %v399_v50  ;;  %v2607_v42 = vld [vmem:[%s3683_s3 + $0xf0] sm:$0xff]  }
  0xb8   : > { %v272_v55 = vpop.xlane.xlu0 %271  ;;  %v2634_v59 = vpop.eup %2633 }
  0xb9   : > { %v552_v60 = vmax.f32 %v520_v52, 0.0  ;;  %v521_v63 = vsub.f32 %v457_v53, %v489_v51  ;;  %v3135_v2 = vmul.f32 0.0078125, %v272_v55  ;;  %v676_v30 = vmul.f32 %v2634_v59, %v580_v7 }
  0xba   : > { %v274_v8 = vpop.xlane.xlu1 %273  ;;  %v582_v51 = vsub.f32 %v2866_v4, %v3119_v11  ;;  %v583_v53 = vsub.f32 %v2869_v5, %v3123_v21  ;;  %v2608_v4 = vld [vmem:[%s3683_s3 + $0xb0] sm:$0xff]   ;;  %v2609_v21 = vld [vmem:[%s3683_s3 + $0x68] sm:$0xff]  }
  0xbb   : > { %v616_v17 = vadd.f32 1e-05, %v552_v60  ;;  %v553_v18 = vmax.f32 %v521_v63, 0.0  ;;  %v490_v22 = vmul.f32 %v3135_v2, %v3135_v2  ;;  %v3141_v28 = vmul.f32 0.0078125, %v274_v8  ;;  %v2606_v63 = vld [vmem:[%s3683_s3 + $0x30] sm:$0xff]  }
  0xbc   : > { %v2636_v27 = vpop.eup %2635  ;;  %v401_v29 = vpop.xlane.xlu0 %400 }
  0xbd   : > { %2641 = vrsqrt.f32 %v616_v17  ;;  %v617_v31 = vadd.f32 1e-05, %v553_v18  ;;  %v458_v32 = vmul.f32 0.0078125, %v401_v29  ;;  %v677_v33 = vmul.f32 %v2636_v27, %v581_v13  ;;  %v2611_v13 = vld [vmem:[%s3683_s3 + $0xe8] sm:$0xff]  }
  0xbe   : > { %v491_v0 = vmul.f32 %v3141_v28, %v3141_v28  ;;  %v403_v46 = vpop.xlane.xlu1 %402 }
  0xbf   : > { %2643 = vrsqrt.f32 %v617_v31  ;;  %v522_v1 = vsub.f32 %v458_v32, %v490_v22  ;;  %v459_v54 = vmul.f32 0.0078125, %v403_v46  ;;  %v708_v34 = vpack.c.bf16 %v677_v33, %v676_v30  ;;  %v2610_v33 = vld [vmem:[%s3683_s3 + $0x28] sm:$0xff]  }
  0xc0   : > { %v276_v40 = vpop.xlane.xlu0 %275 }
  0xc1   : > { %v554_v44 = vmax.f32 %v522_v1, 0.0  ;;  %v523_v45 = vsub.f32 %v459_v54, %v491_v0  ;;  %v3157_v47 = vmul.f32 0.0078125, %v276_v40  ;;  %971 = vmatmul.mubr.bf16.vlgmr.msra.gmra.mxu0 %v708_v34  ;;  %1164 = vmatmul.mubr.bf16.vlgmr.msra.gmra.mxu1 %v708_v34  ;;  %v2612_v0 = vld [vmem:[%s3683_s3 + $0xa8] sm:$0xff]   ;;  %v2613_v1 = vld [vmem:[%s3683_s3 + $0x60] sm:$0xff]  }
  0xc2   : > { %v2638_v50 = vpop.eup %2637  ;;  %v278_v52 = vpop.xlane.xlu1 %277  ;;  %980 = vmatprep.mubr.bf16.mxu0 %v2765_v56  ;;  %1173 = vmatprep.mubr.bf16.mxu1 %v2765_v56  ;;  %v2615_v54 = vld [vmem:[%s3683_s3 + $0xe0] sm:$0xff]  }
  0xc3   : > { %v618_v55 = vadd.f32 1e-05, %v554_v44  ;;  %v555_v59 = vmax.f32 %v523_v45, 0.0  ;;  %v492_v60 = vmul.f32 %v3157_v47, %v3157_v47  ;;  %2288 = vmatpush3.bf16.msra.mxu0 %v2602_v35  ;;  %2400 = vmatpush3.bf16.msra.mxu1 %v2604_v39  ;;  %v3173_v7 = vmul.f32 0.0078125, %v278_v52  ;;  %v2614_v52 = vld [vmem:[%s3683_s3 + $0x20] sm:$0xff]  }
  0xc4   : > { %v2640_v11 = vpop.eup %2639  ;;  %v405_v8 = vpop.xlane.xlu0 %404  ;;  %v678_v5 = vmul.f32 %v2638_v50, %v582_v51  ;;  %2289 = vmatprep.subr.bf16.mxu0 %v2605_v41  ;;  %2401 = vmatprep.subr.bf16.mxu1 %v2607_v42  ;;  %v584_v41 = vsub.f32 %v2890_v12, %v3127_v38  ;;  %v585_v44 = vsub.f32 %v2899_v15, %v3131_v43  ;;  %v2616_v12 = vld [vmem:[%s3683_s3 + $0xa0] sm:$0xff]   ;;  %v2617_v43 = vld [vmem:[%s3683_s3 + $0x58] sm:$0xff]  }
  0xc5   : > { %2645 = vrsqrt.f32 %v618_v55  ;;  %v619_v17 = vadd.f32 1e-05, %v555_v59  ;;  %v460_v18 = vmul.f32 0.0078125, %v405_v8  ;;  %v679_v22 = vmul.f32 %v2640_v11, %v583_v53  ;;  %v2619_v59 = vld [vmem:[%s3683_s3 + $0xd8] sm:$0xff]  }
  0xc6   : > { %v493_v27 = vmul.f32 %v3173_v7, %v3173_v7  ;;  %v407_v29 = vpop.xlane.xlu1 %406 }
  0xc7   : > { %2647 = vrsqrt.f32 %v619_v17  ;;  %v524_v30 = vsub.f32 %v460_v18, %v492_v60  ;;  %v461_v31 = vmul.f32 0.0078125, %v407_v29  ;;  %v709_v32 = vpack.c.bf16 %v679_v22, %v678_v5  ;;  %2290 = vmatpush3.bf16.msra.mxu0 %v2606_v63  ;;  %2402 = vmatpush3.bf16.msra.mxu1 %v2608_v4  ;;  %v2618_v17 = vld [vmem:[%s3683_s3 + $0x18] sm:$0xff]   ;;  %v2623_v29 = vld [vmem:[%s3683_s3 + $0xd0] sm:$0xff]  }
  0xc8   : > { %v280_v46 = vpop.xlane.xlu0 %279  ;;  %2291 = vmatprep.subr.bf16.mxu0 %v2609_v21  ;;  %2403 = vmatprep.subr.bf16.mxu1 %v2611_v13  ;;  %v2620_v18 = vld [vmem:[%s3683_s3 + $0x98] sm:$0xff]  }
  0xc9   : > { %v556_v34 = vmax.f32 %v524_v30, 0.0  ;;  %v525_v35 = vsub.f32 %v461_v31, %v493_v27  ;;  %v3195_v39 = vmul.f32 0.0078125, %v280_v46  ;;  %981 = vmatmul.mubr.bf16.gmra.mxu0 %v709_v32  ;;  %1174 = vmatmul.mubr.bf16.gmra.mxu1 %v709_v32  ;;  %v2621_v27 = vld [vmem:[%s3683_s3 + $0x50] sm:$0xff]  }
  0xca   : > { %v2642_v40 = vpop.eup %2641  ;;  %v282_v42 = vpop.xlane.xlu1 %281  ;;  %990 = vmatprep.mubr.bf16.mxu0 %v2765_v56  ;;  %1183 = vmatprep.mubr.bf16.mxu1 %v2765_v56 }
  0xcb   : > { %v620_v45 = vadd.f32 1e-05, %v556_v34  ;;  %v557_v50 = vmax.f32 %v525_v35, 0.0  ;;  %v494_v51 = vmul.f32 %v3195_v39, %v3195_v39  ;;  %2292 = vmatpush3.bf16.msra.mxu0 %v2610_v33  ;;  %2404 = vmatpush3.bf16.msra.mxu1 %v2612_v0  ;;  %v3211_v53 = vmul.f32 0.0078125, %v282_v42 }
  0xcc   : > { %v2644_v38 = vpop.eup %2643  ;;  %v409_v55 = vpop.xlane.xlu0 %408  ;;  %v680_v15 = vmul.f32 %v2642_v40, %v584_v41  ;;  %2293 = vmatprep.subr.bf16.mxu0 %v2613_v1  ;;  %2405 = vmatprep.subr.bf16.mxu1 %v2615_v54  ;;  %v586_v0 = vsub.f32 %v2926_v24, %v3135_v2  ;;  %v587_v1 = vsub.f32 %v2929_v25, %v3141_v28  ;;  %v2622_v40 = vld [vmem:[%s3683_s3 + $0x10] sm:$0xff]   ;;  %v2625_v28 = vld [vmem:[%s3683_s3 + $0x48] sm:$0xff]  }
  0xcd   : > { %2649 = vrsqrt.f32 %v620_v45  ;;  %v621_v60 = vadd.f32 1e-05, %v557_v50  ;;  %v462_v63 = vmul.f32 0.0078125, %v409_v55  ;;  %v681_v4 = vmul.f32 %v2644_v38, %v585_v44  ;;  %v2624_v24 = vld [vmem:[%s3683_s3 + $0x90] sm:$0xff]   ;;  %v2627_v44 = vld [vmem:[%s3683_s3 + $0xc8] sm:$0xff]  }
  0xce   : > { %v495_v11 = vmul.f32 %v3211_v53, %v3211_v53  ;;  %v411_v8 = vpop.xlane.xlu1 %410 }
  0xcf   : > { %2651 = vrsqrt.f32 %v621_v60  ;;  %v526_v5 = vsub.f32 %v462_v63, %v494_v51  ;;  %v463_v21 = vmul.f32 0.0078125, %v411_v8  ;;  %v710_v13 = vpack.c.bf16 %v681_v4, %v680_v15  ;;  %2294 = vmatpush3.bf16.msra.mxu0 %v2614_v52  ;;  %2406 = vmatpush3.bf16.msra.mxu1 %v2616_v12  ;;  %v2629_v63 = vld [vmem:[%s3683_s3 + $0x40] sm:$0xff]  }
  0xd0   : > { %v284_v22 = vpop.xlane.xlu0 %283  ;;  %2295 = vmatprep.subr.bf16.mxu0 %v2617_v43  ;;  %2407 = vmatprep.subr.bf16.mxu1 %v2619_v59  ;;  %v2626_v43 = vld [vmem:[%s3683_s3 + $0x8] sm:$0xff]   ;;  %v2631_v4 = vld [vmem:[%s3683_s3 + $0xc0] sm:$0xff]  }
  0xd1   : > { %v558_v30 = vmax.f32 %v526_v5, 0.0  ;;  %v527_v31 = vsub.f32 %v463_v21, %v495_v11  ;;  %v3233_v32 = vmul.f32 0.0078125, %v284_v22  ;;  %991 = vmatmul.mubr.bf16.gmra.mxu0 %v710_v13  ;;  %1184 = vmatmul.mubr.bf16.gmra.mxu1 %v710_v13  ;;  %v2628_v59 = vld [vmem:[%s3683_s3 + $0x88] sm:$0xff]   ;;  %v588_v13 = vsub.f32 %v2962_v36, %v3157_v47 }
  0xd2   : > { %v2646_v33 = vpop.eup %2645  ;;  %v286_v46 = vpop.xlane.xlu1 %285  ;;  %1000 = vmatprep.mubr.bf16.mxu0 %v2765_v56  ;;  %1193 = vmatprep.mubr.bf16.mxu1 %v2765_v56 }
  0xd3   : > { %v622_v54 = vadd.f32 1e-05, %v558_v30  ;;  %v559_v34 = vmax.f32 %v527_v31, 0.0  ;;  %v496_v35 = vmul.f32 %v3233_v32, %v3233_v32  ;;  %2296 = vmatpush3.bf16.msra.mxu0 %v2618_v17  ;;  %2408 = vmatpush3.bf16.msra.mxu1 %v2620_v18  ;;  %v3249_v41 = vmul.f32 0.0078125, %v286_v46  ;;  %v2630_v30 = vld [vmem:[%s3683_s3] sm:$0xff]  }
  0xd4   : > { %v2648_v2 = vpop.eup %2647  ;;  %v413_v42 = vpop.xlane.xlu0 %412  ;;  %v682_v25 = vmul.f32 %v2646_v33, %v586_v0  ;;  %2297 = vmatprep.subr.bf16.mxu0 %v2621_v27  ;;  %2409 = vmatprep.subr.bf16.mxu1 %v2623_v29  ;;  %v589_v18 = vsub.f32 %v2965_v37, %v3173_v7 }
  0xd5   : > { %2653 = vrsqrt.f32 %v622_v54  ;;  %v623_v45 = vadd.f32 1e-05, %v559_v34  ;;  %v464_v50 = vmul.f32 0.0078125, %v413_v42  ;;  %v683_v51 = vmul.f32 %v2648_v2, %v587_v1 }
  0xd6   : > { %v497_v52 = vmul.f32 %v3249_v41, %v3249_v41  ;;  %v415_v12 = vpop.xlane.xlu1 %414 }
  0xd7   : > { %2655 = vrsqrt.f32 %v623_v45  ;;  %v528_v38 = vsub.f32 %v464_v50, %v496_v35  ;;  %v465_v55 = vmul.f32 0.0078125, %v415_v12  ;;  %v711_v15 = vpack.c.bf16 %v683_v51, %v682_v25  ;;  %2298 = vmatpush3.bf16.msra.mxu0 %v2622_v40  ;;  %2410 = vmatpush3.bf16.msra.mxu1 %v2624_v24 }
  0xd8   : > { %v288_v60 = vpop.xlane.xlu0 %287  ;;  %2299 = vmatprep.subr.bf16.mxu0 %v2625_v28  ;;  %2411 = vmatprep.subr.bf16.mxu1 %v2627_v44  ;;  %v590_v28 = vsub.f32 %v2998_v48, %v3195_v39  ;;  %v591_v45 = vsub.f32 %v3001_v49, %v3211_v53 }
  0xd9   : > { %v560_v11 = vmax.f32 %v528_v38, 0.0  ;;  %v529_v8 = vsub.f32 %v465_v55, %v497_v52  ;;  %v3271_v5 = vmul.f32 0.0078125, %v288_v60  ;;  %1001 = vmatmul.mubr.bf16.gmra.mxu0 %v711_v15  ;;  %1194 = vmatmul.mubr.bf16.gmra.mxu1 %v711_v15 }
  0xda   : > { %v2650_v21 = vpop.eup %2649  ;;  %v290_v17 = vpop.xlane.xlu1 %289  ;;  %1010 = vmatprep.mubr.bf16.mxu0 %v2765_v56  ;;  %1203 = vmatprep.mubr.bf16.mxu1 %v2765_v56 }
  0xdb   : > { %v624_v22 = vadd.f32 1e-05, %v560_v11  ;;  %v561_v27 = vmax.f32 %v529_v8, 0.0  ;;  %v498_v29 = vmul.f32 %v3271_v5, %v3271_v5  ;;  %2300 = vmatpush3.bf16.msra.mxu0 %v2626_v43  ;;  %2412 = vmatpush3.bf16.msra.mxu1 %v2628_v59  ;;  %v3284_v47 = vmul.f32 0.0078125, %v290_v17 }
  0xdc   : > { %v2652_v36 = vpop.eup %2651  ;;  %v417_v31 = vpop.xlane.xlu0 %416  ;;  %v684_v33 = vmul.f32 %v2650_v21, %v588_v13  ;;  %2301 = vmatprep.subr.bf16.mxu0 %v2629_v63  ;;  %2413 = vmatprep.subr.bf16.mxu1 %v2631_v4  ;;  %v592_v17 = vsub.f32 %v3024_v57, %v3233_v32 }
  0xdd   : > { %2657 = vrsqrt.f32 %v624_v22  ;;  %v625_v37 = vadd.f32 1e-05, %v561_v27  ;;  %v466_v7 = vmul.f32 0.0078125, %v417_v31  ;;  %v685_v0 = vmul.f32 %v2652_v36, %v589_v18 }
  0xde   : > { %v499_v46 = vmul.f32 %v3284_v47, %v3284_v47  ;;  %v419_v1 = vpop.xlane.xlu1 %418  ;;  %v593_v22 = vsub.f32 %v3027_v58, %v3249_v41 }
  0xdf   : > { %2659 = vrsqrt.f32 %v625_v37  ;;  %v530_v54 = vsub.f32 %v466_v7, %v498_v29  ;;  %v467_v34 = vmul.f32 0.0078125, %v419_v1  ;;  %v712_v35 = vpack.c.bf16 %v685_v0, %v684_v33  ;;  %2302 = vmatpush3.bf16.msra.mxu0 %v2630_v30 }
  0xe0   : > { %v292_v40 = vpop.xlane.xlu0 %291 }
  0xe1   : > { %v562_v24 = vmax.f32 %v530_v54, 0.0  ;;  %v531_v2 = vsub.f32 %v467_v34, %v499_v46  ;;  %v3288_v42 = vmul.f32 0.0078125, %v292_v40  ;;  %1011 = vmatmul.mubr.bf16.gmra.mxu0 %v712_v35  ;;  %1204 = vmatmul.mubr.bf16.gmra.mxu1 %v712_v35 }
  0xe2   : > { %v2654_v25 = vpop.eup %2653  ;;  %v294_v44 = vpop.xlane.xlu1 %293  ;;  %1020 = vmatprep.mubr.bf16.mxu0 %v2765_v56  ;;  %1213 = vmatprep.mubr.bf16.mxu1 %v2765_v56 }
  0xe3   : > { %v626_v50 = vadd.f32 1e-05, %v562_v24  ;;  %v563_v51 = vmax.f32 %v531_v2, 0.0  ;;  %v500_v52 = vmul.f32 %v3288_v42, %v3288_v42  ;;  %v3298_v38 = vmul.f32 0.0078125, %v294_v44 }
  0xe4   : > { %v2656_v12 = vpop.eup %2655  ;;  %v421_v55 = vpop.xlane.xlu0 %420  ;;  %v686_v15 = vmul.f32 %v2654_v25, %v590_v28  ;;  %v594_v2 = vsub.f32 %v3036_v61, %v3271_v5  ;;  %v595_v28 = vsub.f32 %v3039_v62, %v3284_v47 }
  0xe5   : > { %2661 = vrsqrt.f32 %v626_v50  ;;  %v627_v48 = vadd.f32 1e-05, %v563_v51  ;;  %v468_v39 = vmul.f32 0.0078125, %v421_v55  ;;  %v687_v43 = vmul.f32 %v2656_v12, %v591_v45 }
  0xe6   : > { %v501_v59 = vmul.f32 %v3298_v38, %v3298_v38  ;;  %v423_v60 = vpop.xlane.xlu1 %422 }
  0xe7   : > { %2663 = vrsqrt.f32 %v627_v48  ;;  %v532_v49 = vsub.f32 %v468_v39, %v500_v52  ;;  %v469_v53 = vmul.f32 0.0078125, %v423_v60  ;;  %v713_v63 = vpack.c.bf16 %v687_v43, %v686_v15 }
  0xe8   : > { %v296_v4 = vpop.xlane.xlu0 %295 }
  0xe9   : > { %v564_v11 = vmax.f32 %v532_v49, 0.0  ;;  %v533_v8 = vsub.f32 %v469_v53, %v501_v59  ;;  %v3302_v21 = vmul.f32 0.0078125, %v296_v4  ;;  %1021 = vmatmul.mubr.bf16.gmra.mxu0 %v713_v63  ;;  %1214 = vmatmul.mubr.bf16.gmra.mxu1 %v713_v63  ;;  %v596_v4 = vsub.f32 %v3048_v3, %v3288_v42 }
  0xea   : > { %v2658_v13 = vpop.eup %2657  ;;  %v298_v18 = vpop.xlane.xlu1 %297  ;;  %1030 = vmatprep.mubr.bf16.mxu0 %v2765_v56  ;;  %1223 = vmatprep.mubr.bf16.mxu1 %v2765_v56 }
  0xeb   : > { %v628_v27 = vadd.f32 1e-05, %v564_v11  ;;  %v565_v29 = vmax.f32 %v533_v8, 0.0  ;;  %v502_v30 = vmul.f32 %v3302_v21, %v3302_v21  ;;  %v3312_v31 = vmul.f32 0.0078125, %v298_v18 }
  0xec   : > { %v2660_v36 = vpop.eup %2659  ;;  %v425_v33 = vpop.xlane.xlu0 %424  ;;  %v688_v37 = vmul.f32 %v2658_v13, %v592_v17  ;;  %v597_v8 = vsub.f32 %v3051_v6, %v3298_v38 }
  0xed   : > { %2665 = vrsqrt.f32 %v628_v27  ;;  %v629_v57 = vadd.f32 1e-05, %v565_v29  ;;  %v470_v32 = vmul.f32 0.0078125, %v425_v33  ;;  %v689_v7 = vmul.f32 %v2660_v36, %v593_v22 }
  0xee   : > { %v503_v0 = vmul.f32 %v3312_v31, %v3312_v31  ;;  %v427_v46 = vpop.xlane.xlu1 %426 }
  0xef   : > { %2667 = vrsqrt.f32 %v629_v57  ;;  %v534_v58 = vsub.f32 %v470_v32, %v502_v30  ;;  %v471_v41 = vmul.f32 0.0078125, %v427_v46  ;;  %v714_v1 = vpack.c.bf16 %v689_v7, %v688_v37 }
  0xf0   : > { %v300_v54 = vpop.xlane.xlu0 %299 }
  0xf1   : > { %v566_v34 = vmax.f32 %v534_v58, 0.0  ;;  %v535_v35 = vsub.f32 %v471_v41, %v503_v0  ;;  %v3316_v40 = vmul.f32 0.0078125, %v300_v54  ;;  %1031 = vmatmul.mubr.bf16.gmra.mxu0 %v714_v1  ;;  %1224 = vmatmul.mubr.bf16.gmra.mxu1 %v714_v1  ;;  %v598_v41 = vsub.f32 %v3060_v9, %v3302_v21  ;;  %v2632_v9 = vld [vmem:[%s3683_s3 + $0x80] sm:$0xff]  }
  0xf2   : > { %v2662_v24 = vpop.eup %2661  ;;  %v302_v25 = vpop.xlane.xlu1 %301  ;;  %1040 = vmatprep.mubr.bf16.mxu0 %v2765_v56  ;;  %1233 = vmatprep.mubr.bf16.mxu1 %v2765_v56  ;;  %v599_v54 = vsub.f32 %v3063_v10, %v3312_v31 }
  0xf3   : > { %v630_v44 = vadd.f32 1e-05, %v566_v34  ;;  %v567_v45 = vmax.f32 %v535_v35, 0.0  ;;  %v504_v50 = vmul.f32 %v3316_v40, %v3316_v40  ;;  %v3326_v52 = vmul.f32 0.0078125, %v302_v25  ;;  %2414 = vmatpush3.bf16.msra.mxu1 %v2632_v9 }
  0xf4   : > { %v2664_v51 = vpop.eup %2663  ;;  %v429_v12 = vpop.xlane.xlu0 %428  ;;  %v690_v55 = vmul.f32 %v2662_v24, %v594_v2 }
  0xf5   : > { %2669 = vrsqrt.f32 %v630_v44  ;;  %v631_v61 = vadd.f32 1e-05, %v567_v45  ;;  %v472_v5 = vmul.f32 0.0078125, %v429_v12  ;;  %v691_v15 = vmul.f32 %v2664_v51, %v595_v28 }
  0xf6   : > { %v505_v48 = vmul.f32 %v3326_v52, %v3326_v52  ;;  %v431_v39 = vpop.xlane.xlu1 %430 }
  0xf7   : > { %2671 = vrsqrt.f32 %v631_v61  ;;  %v536_v62 = vsub.f32 %v472_v5, %v504_v50  ;;  %v473_v47 = vmul.f32 0.0078125, %v431_v39  ;;  %v715_v43 = vpack.c.bf16 %v691_v15, %v690_v55 }
  0xf8   : > { %v304_v59 = vpop.xlane.xlu0 %303 }
  0xf9   : > { %v568_v60 = vmax.f32 %v536_v62, 0.0  ;;  %v537_v49 = vsub.f32 %v473_v47, %v505_v48  ;;  %v3330_v53 = vmul.f32 0.0078125, %v304_v59  ;;  %1041 = vmatmul.mubr.bf16.gmra.mxu0 %v715_v43  ;;  %1234 = vmatmul.mubr.bf16.gmra.mxu1 %v715_v43  ;;  %v600_v62 = vsub.f32 %v3072_v14, %v3316_v40 }
  0xfa   : > { %v2666_v63 = vpop.eup %2665  ;;  %v306_v11 = vpop.xlane.xlu1 %305  ;;  %1050 = vmatprep.mubr.bf16.mxu0 %v2765_v56  ;;  %1243 = vmatprep.mubr.bf16.mxu1 %v2765_v56  ;;  %v601_v43 = vsub.f32 %v3075_v16, %v3326_v52 }
  0xfb   : > { %v632_v13 = vadd.f32 1e-05, %v568_v60  ;;  %v569_v17 = vmax.f32 %v537_v49, 0.0  ;;  %v506_v18 = vmul.f32 %v3330_v53, %v3330_v53  ;;  %v3340_v27 = vmul.f32 0.0078125, %v306_v11 }
  0xfc   : > { %v2668_v22 = vpop.eup %2667  ;;  %v433_v29 = vpop.xlane.xlu0 %432  ;;  %v692_v30 = vmul.f32 %v2666_v63, %v596_v4 }
  0xfd   : > { %2673 = vrsqrt.f32 %v632_v13  ;;  %v633_v3 = vadd.f32 1e-05, %v569_v17  ;;  %v474_v42 = vmul.f32 0.0078125, %v433_v29  ;;  %v693_v36 = vmul.f32 %v2668_v22, %v597_v8 }
  0xfe   : > { %v507_v33 = vmul.f32 %v3340_v27, %v3340_v27  ;;  %v435_v37 = vpop.xlane.xlu1 %434 }
  0xff   : > { %2675 = vrsqrt.f32 %v633_v3  ;;  %v538_v6 = vsub.f32 %v474_v42, %v506_v18  ;;  %v475_v38 = vmul.f32 0.0078125, %v435_v37  ;;  %v716_v57 = vpack.c.bf16 %v693_v36, %v692_v30 }
 0x100   : > { %v308_v32 = vpop.xlane.xlu0 %307 }
 0x101   : > { %v570_v7 = vmax.f32 %v538_v6, 0.0  ;;  %v539_v0 = vsub.f32 %v475_v38, %v507_v33  ;;  %v3344_v46 = vmul.f32 0.0078125, %v308_v32  ;;  %1051 = vmatmul.mubr.bf16.gmra.mxu0 %v716_v57  ;;  %1244 = vmatmul.mubr.bf16.gmra.mxu1 %v716_v57  ;;  %v602_v33 = vsub.f32 %v3084_v19, %v3330_v53 }
 0x102   : > { %v2670_v58 = vpop.eup %2669  ;;  %v310_v1 = vpop.xlane.xlu1 %309  ;;  %1060 = vmatprep.mubr.bf16.mxu0 %v2765_v56  ;;  %1253 = vmatprep.mubr.bf16.mxu1 %v2765_v56  ;;  %v603_v6 = vsub.f32 %v3087_v20, %v3340_v27 }
 0x103   : > { %v634_v34 = vadd.f32 1e-05, %v570_v7  ;;  %v571_v35 = vmax.f32 %v539_v0, 0.0  ;;  %v508_v24 = vmul.f32 %v3344_v46, %v3344_v46  ;;  %v3354_v25 = vmul.f32 0.0078125, %v310_v1 }
 0x104   : > { %v2672_v2 = vpop.eup %2671  ;;  %v437_v28 = vpop.xlane.xlu0 %436  ;;  %v694_v44 = vmul.f32 %v2670_v58, %v598_v41 }
 0x105   : > { %2677 = vrsqrt.f32 %v634_v34  ;;  %v635_v21 = vadd.f32 1e-05, %v571_v35  ;;  %v476_v45 = vmul.f32 0.0078125, %v437_v28  ;;  %v695_v50 = vmul.f32 %v2672_v2, %v599_v54 }
 0x106   : > { %v509_v10 = vmul.f32 %v3354_v25, %v3354_v25  ;;  %v439_v31 = vpop.xlane.xlu1 %438 }
 0x107   : > { %2679 = vrsqrt.f32 %v635_v21  ;;  %v540_v51 = vsub.f32 %v476_v45, %v508_v24  ;;  %v477_v12 = vmul.f32 0.0078125, %v439_v31  ;;  %v717_v55 = vpack.c.bf16 %v695_v50, %v694_v44 }
 0x108   : > { %v312_v61 = vpop.xlane.xlu0 %311  ;;  %v604_v21 = vsub.f32 %v3096_v23, %v3344_v46  ;;  %v605_v50 = vsub.f32 %v3099_v26, %v3354_v25 }
 0x109   : > { %v572_v5 = vmax.f32 %v540_v51, 0.0  ;;  %v541_v15 = vsub.f32 %v477_v12, %v509_v10  ;;  %v3361_v48 = vmul.f32 0.0078125, %v312_v61  ;;  %1061 = vmatmul.mubr.bf16.gmra.mxu0 %v717_v55  ;;  %1254 = vmatmul.mubr.bf16.gmra.mxu1 %v717_v55 }
 0x10a   : > { %v2674_v39 = vpop.eup %2673  ;;  %v314_v47 = vpop.xlane.xlu1 %313  ;;  %1070 = vmatprep.mubr.bf16.mxu0 %v2765_v56  ;;  %1263 = vmatprep.mubr.bf16.mxu1 %v2765_v56 }
 0x10b   : > { %v636_v59 = vadd.f32 1e-05, %v572_v5  ;;  %v573_v60 = vmax.f32 %v541_v15, 0.0  ;;  %v510_v49 = vmul.f32 %v3361_v48, %v3361_v48  ;;  %v3371_v4 = vmul.f32 0.0078125, %v314_v47 }
 0x10c   : > { %v2676_v63 = vpop.eup %2675  ;;  %v441_v11 = vpop.xlane.xlu0 %440  ;;  %v696_v8 = vmul.f32 %v2674_v39, %v600_v62 }
 0x10d   : > { %2681 = vrsqrt.f32 %v636_v59  ;;  %v637_v14 = vadd.f32 1e-05, %v573_v60  ;;  %v478_v40 = vmul.f32 0.0078125, %v441_v11  ;;  %v697_v13 = vmul.f32 %v2676_v63, %v601_v43  ;;  %v2698_v11 = vld [vmem:[%s2851_s9 + $0xd8] sm:$0xff] }
 0x10e   : > { %v511_v17 = vmul.f32 %v3371_v4, %v3371_v4  ;;  %v443_v18 = vpop.xlane.xlu1 %442 }
 0x10f   : > { %2683 = vrsqrt.f32 %v637_v14  ;;  %v542_v16 = vsub.f32 %v478_v40, %v510_v49  ;;  %v479_v52 = vmul.f32 0.0078125, %v443_v18  ;;  %v718_v22 = vpack.c.bf16 %v697_v13, %v696_v8  ;;  %v2697_v49 = vld [vmem:[%s2851_s9 + $0xd0] sm:$0xff] }
 0x110   : > { %v316_v29 = vpop.xlane.xlu0 %315  ;;  %v606_v63 = vsub.f32 %v2697_v49, %v3361_v48  ;;  %v607_v8 = vsub.f32 %v2698_v11, %v3371_v4  ;;  %v2699_v48 = vld [vmem:[%s2851_s9 + $0xe0] sm:$0xff] }
 0x111   : > { %v574_v30 = vmax.f32 %v542_v16, 0.0  ;;  %v543_v3 = vsub.f32 %v479_v52, %v511_v17  ;;  %v3375_v42 = vmul.f32 0.0078125, %v316_v29  ;;  %1071 = vmatmul.mubr.bf16.gmra.mxu0 %v718_v22  ;;  %1264 = vmatmul.mubr.bf16.gmra.mxu1 %v718_v22  ;;  %v2700_v29 = vld [vmem:[%s2851_s9 + $0xe8] sm:$0xff] }
 0x112   : > { %v2678_v36 = vpop.eup %2677  ;;  %v318_v37 = vpop.xlane.xlu1 %317  ;;  %1080 = vmatprep.mubr.bf16.mxu0 %v2765_v56  ;;  %1273 = vmatprep.mubr.bf16.mxu1 %v2765_v56 }
 0x113   : > { %v638_v38 = vadd.f32 1e-05, %v574_v30  ;;  %v575_v57 = vmax.f32 %v543_v3, 0.0  ;;  %v512_v32 = vmul.f32 %v3375_v42, %v3375_v42  ;;  %v3385_v0 = vmul.f32 0.0078125, %v318_v37 }
 0x114   : > { %v2680_v7 = vpop.eup %2679  ;;  %v445_v58 = vpop.xlane.xlu0 %444  ;;  %v698_v41 = vmul.f32 %v2678_v36, %v602_v33  ;;  %v608_v4 = vsub.f32 %v2699_v48, %v3375_v42 }
 0x115   : > { %2685 = vrsqrt.f32 %v638_v38  ;;  %v639_v19 = vadd.f32 1e-05, %v575_v57  ;;  %v480_v53 = vmul.f32 0.0078125, %v445_v58  ;;  %v699_v1 = vmul.f32 %v2680_v7, %v603_v6  ;;  %v2701_v38 = vld [vmem:[%s2851_s9 + $0xf0] sm:$0xff] }
 0x116   : > { %v513_v54 = vmul.f32 %v3385_v0, %v3385_v0  ;;  %v447_v34 = vpop.xlane.xlu1 %446  ;;  %v609_v30 = vsub.f32 %v2700_v29, %v3385_v0 }
 0x117   : > { %2687 = vrsqrt.f32 %v639_v19  ;;  %v544_v20 = vsub.f32 %v480_v53, %v512_v32  ;;  %v481_v27 = vmul.f32 0.0078125, %v447_v34  ;;  %v719_v35 = vpack.c.bf16 %v699_v1, %v698_v41  ;;  %v2702_v32 = vld [vmem:[%s2851_s9 + $0xf8] sm:$0xff]  ;;  %s216_s9 = sand.u32 1, %s2755_s19  }
 0x118   : > { %v320_v24 = vpop.xlane.xlu0 %319  ;;  %v758_v19 = vlaneseq  ;;  %s2213_s6 = sshll.u32 %s216_s9, 8  ;;  %s3640_s14 = scalar_lea.sflag [#allocation3], %s216_s9 }
 0x119   : > { %v576_v2 = vmax.f32 %v544_v20, 0.0  ;;  %v545_v28 = vsub.f32 %v481_v27, %v513_v54  ;;  %v3389_v44 = vmul.f32 0.0078125, %v320_v24  ;;  %1081 = vmatmul.mubr.bf16.gmra.mxu0 %v719_v35  ;;  %1274 = vmatmul.mubr.bf16.gmra.mxu1 %v719_v35  ;;  %s3564_s7 = scalar_lea.vmem [#allocation2], %s2213_s6 }
 0x11a   : > { %v2682_v9 = vpop.eup %2681  ;;  %v322_v45 = vpop.xlane.xlu1 %321  ;;  %1090 = vmatprep.mubr.bf16.mxu0 %v2765_v56  ;;  %1283 = vmatprep.mubr.bf16.mxu1 %v2765_v56  ;;  %v759_v53 = vshrl.u32 %v758_v19, 7  ;;  %s2147_s10 = sshll.u32 %s3564_s7, 4  ;;  %s3635_s10 = int_to_ptr.vmem [resolvable:$true] %s2147_s10 }
 0x11b   : > { %v640_v10 = vadd.f32 1e-05, %v576_v2  ;;  %v577_v31 = vmax.f32 %v545_v28, 0.0  ;;  %v514_v51 = vmul.f32 %v3389_v44, %v3389_v44  ;;  %v355_v55 = vmul.f32 0.0078125, %v322_v45  ;;  %s2703_s22 = scalar_lea.vmem %s3635_s10, 4096  ;;  %p2710_p0 = scmp.lt.s32.totalorder %s3635_s10, %s2708_s16 }
 0x11c   : > { %v2684_v12 = vpop.eup %2683  ;;  %v449_v61 = vpop.xlane.xlu0 %448  ;;  %v700_v5 = vmul.f32 %v2682_v9, %v604_v21  ;;  %v610_v57 = vsub.f32 %v2701_v38, %v3389_v44  ;;  %v764_v1 = vsub.s32 1, %v759_v53  ;;  %v772_v54 = vsub.s32 3, %v759_v53  ;;  %p2704_p11 = scmp.ne.s32.totalorder %s3635_s10, %s2703_s22  ;;  %p2711_p1 = scmp.lt.s32.totalorder %s2709_s17, %s2703_s22 }
 0x11d   : > { %2689 = vrsqrt.f32 %v640_v10  ;;  %v641_v15 = vadd.f32 1e-05, %v577_v31  ;;  %v482_v23 = vmul.f32 0.0078125, %v449_v61  ;;  %v701_v46 = vmul.f32 %v2684_v12, %v605_v50 }
 0x11e   : > { %v515_v39 = vmul.f32 %v355_v55, %v355_v55  ;;  %v451_v62 = vpop.xlane.xlu1 %450  ;;  %v611_v7 = vsub.f32 %v2702_v32, %v355_v55  ;;  %v760_v34 = vsub.s32 0, %v759_v53  ;;  %v768_v20 = vsub.s32 2, %v759_v53  ;;  %p2705_p12 = pnand %p2704_p11, %p2837_p5  ;;  %p2712_p2 = por %p2711_p1, %p2710_p0 }
 0x11f   : > { %2691 = vrsqrt.f32 %v641_v15  ;;  %v546_v47 = vsub.f32 %v482_v23, %v514_v51  ;;  %v483_v26 = vmul.f32 0.0078125, %v451_v62  ;;  %v720_v25 = vpack.c.bf16 %v701_v46, %v700_v5 }
 0x120   : > { %p2706_p13 = pneg %p2705_p12 }
 0x121   : > { %v578_v43 = vmax.f32 %v546_v47, 0.0  ;;  %v547_v59 = vsub.f32 %v483_v26, %v515_v39  ;;  %1091 = vmatmul.mubr.bf16.gmra.mxu0 %v720_v25  ;;  %1284 = vmatmul.mubr.bf16.gmra.mxu1 %v720_v25 }
 0x122   : > { %v2686_v60 = vpop.eup %2685  ;;  %1100 = vmatprep.mubr.bf16.mxu0 %v2765_v56  ;;  %1293 = vmatprep.mubr.bf16.mxu1 %v2765_v56  ;;  %p2713_p3 = pnand %p2712_p2, %p2706_p13 }
 0x123   : > { %v642_v14 = vadd.f32 1e-05, %v578_v43  ;;  %v579_v40 = vmax.f32 %v547_v59, 0.0  ;;  %v702_v18 = vmul.f32 %v2686_v60, %v606_v63 }
 0x124   : > { %v2688_v13 = vpop.eup %2687 }
 0x125   : > { %2693 = vrsqrt.f32 %v642_v14  ;;  %v643_v17 = vadd.f32 1e-05, %v579_v40  ;;  %v703_v16 = vmul.f32 %v2688_v13, %v607_v8 }
 0x127   : > { %2695 = vrsqrt.f32 %v643_v17  ;;  %v721_v52 = vpack.c.bf16 %v703_v16, %v702_v18 }
 0x129   : > { %1101 = vmatmul.mubr.bf16.gmra.mxu0 %v721_v52  ;;  %1294 = vmatmul.mubr.bf16.gmra.mxu1 %v721_v52 }
 0x12a   : > { %v2690_v22 = vpop.eup %2689  ;;  %1110 = vmatprep.mubr.bf16.mxu0 %v2765_v56  ;;  %1303 = vmatprep.mubr.bf16.mxu1 %v2765_v56 }
 0x12b   : > { %v704_v36 = vmul.f32 %v2690_v22, %v608_v4 }
 0x12c   : > { %v2692_v3 = vpop.eup %2691 }
 0x12d   : > { %v705_v33 = vmul.f32 %v2692_v3, %v609_v30 }
 0x12f   : > { %v722_v37 = vpack.c.bf16 %v705_v33, %v704_v36 }
 0x131   : > { %1111 = vmatmul.mubr.bf16.gmra.mxu0 %v722_v37  ;;  %1304 = vmatmul.mubr.bf16.gmra.mxu1 %v722_v37 }
 0x132   : > { %v2694_v6 = vpop.eup %2693  ;;  %1120 = vmatprep.mubr.bf16.mxu0 %v2765_v56  ;;  %1313 = vmatprep.mubr.bf16.mxu1 %v2765_v56  ;;  %v756_v56 = vld [vmem:[%s3682_s2] sm:$0xf] }
 0x133   : > { %v706_v58 = vmul.f32 %v2694_v6, %v610_v57  ;;  %v3419_v24 = vrot.slane %v756_v56, %v764_v1  ;;  %v3421_v2 = vrot.slane %v756_v56, %v772_v54  ;;  %v3423_v28 = vrot.slane %v756_v56, %v760_v34 }
 0x134   : > { %v2696_v42 = vpop.eup %2695  ;;  %v3425_v44 = vrot.slane %v756_v56, %v768_v20 }
 0x135   : > { %v707_v41 = vmul.f32 %v2696_v42, %v611_v7 }
 0x137   : > { %v723_v0 = vpack.c.bf16 %v707_v41, %v706_v58 }
 0x139   : > { %1121 = vmatmul.mubr.bf16.gmra.mxu0 %v723_v0  ;;  %1314 = vmatmul.mubr.bf16.gmra.mxu1 %v723_v0 }
 0x181   : > { %v972_v27 = vpop.f32.mrf.mxu0  ;;  %v1165_v35 = vpop.f32.mrf.mxu1 }
 0x182   : > { %v973_v55 = vadd.f32 %v972_v27, %v3423_v28  ;;  %v1166_v61 = vadd.f32 %v1165_v35, %v3425_v44 }
 0x183   : > { %v974_v9 = vpop.f32.mrf.mxu0  ;;  %v1167_v21 = vpop.f32.mrf.mxu1 }
 0x184   : > { %v975_v10 = vadd.f32 %v974_v9, %v3419_v24  ;;  %v1168_v31 = vadd.f32 %v1167_v21, %v3421_v2  ;;  %v1324_v49 = vmax.f32 %v973_v55, 0.0  ;;  %v1326_v63 = vmax.f32 %v1166_v61, 0.0 }
 0x185   : > { %v976_v45 = vpop.f32.mrf.mxu0  ;;  %v1169_v50 = vpop.f32.mrf.mxu1 }
 0x186   : > { %v977_v51 = vadd.f32 %v976_v45, %v3423_v28  ;;  %v1170_v12 = vadd.f32 %v1169_v50, %v3425_v44  ;;  %v1325_v25 = vmax.f32 %v975_v10, 0.0  ;;  %v1327_v43 = vmax.f32 %v1168_v31, 0.0 }
 0x187   : > { %v978_v5 = vpop.f32.mrf.mxu0  ;;  %v1171_v15 = vpop.f32.mrf.mxu1 }
 0x188   : > { %v979_v23 = vadd.f32 %v978_v5, %v3419_v24  ;;  %v1172_v46 = vadd.f32 %v1171_v15, %v3421_v2  ;;  %v1328_v39 = vmax.f32 %v977_v51, 0.0  ;;  %v1330_v62 = vmax.f32 %v1170_v12, 0.0 }
 0x189   : > { %v982_v47 = vpop.f32.mrf.mxu0  ;;  %v1175_v26 = vpop.f32.mrf.mxu1 }
 0x18a   : > { %v1329_v59 = vmax.f32 %v979_v23, 0.0  ;;  %v1331_v60 = vmax.f32 %v1172_v46, 0.0  ;;  %v1452_v13 = vpack.c.bf16 %v1328_v39, %v1324_v49  ;;  %v1454_v17 = vpack.c.bf16 %v1330_v62, %v1326_v63 }
 0x18b   : > { %v984_v11 = vpop.f32.mrf.mxu0  ;;  %v1177_v8 = vpop.f32.mrf.mxu1  ;;  %v983_v29 = vadd.f32 %v982_v47, %v3423_v28  ;;  %v1176_v30 = vadd.f32 %v1175_v26, %v3425_v44 }
 0x18c   : > { %v1453_v14 = vpack.c.bf16 %v1329_v59, %v1325_v25  ;;  %v1455_v40 = vpack.c.bf16 %v1331_v60, %v1327_v43  ;;  %v985_v18 = vadd.f32 %v984_v11, %v3419_v24  ;;  %v1178_v22 = vadd.f32 %v1177_v8, %v3421_v2 }
 0x18d   : > { %v986_v16 = vpop.f32.mrf.mxu0  ;;  %v1179_v52 = vpop.f32.mrf.mxu1  ;;  %v1332_v0 = vmax.f32 %v983_v29, 0.0  ;;  %v1334_v19 = vmax.f32 %v1176_v30, 0.0 }
 0x18e   : > { %v987_v48 = vadd.f32 %v986_v16, %v3423_v28  ;;  %v1180_v4 = vadd.f32 %v1179_v52, %v3425_v44  ;;  %1811 = vmatprep.mubr.bf16.mxu0 %v1453_v14  ;;  %1972 = vmatprep.mubr.bf16.mxu1 %v1455_v40  ;;  %v1333_v7 = vmax.f32 %v985_v18, 0.0  ;;  %v1335_v42 = vmax.f32 %v1178_v22, 0.0 }
 0x18f   : > { %v988_v3 = vpop.f32.mrf.mxu0  ;;  %v1181_v36 = vpop.f32.mrf.mxu1  ;;  %1812 = vmatmul.mubr.bf16.vlgmr.msra.gmra.mxu0 %v1452_v13  ;;  %1973 = vmatmul.mubr.bf16.vlgmr.msra.gmra.mxu1 %v1454_v17 }
 0x190   : > { %v989_v33 = vadd.f32 %v988_v3, %v3419_v24  ;;  %v1182_v37 = vadd.f32 %v1181_v36, %v3421_v2  ;;  %v1336_v6 = vmax.f32 %v987_v48, 0.0  ;;  %v1338_v38 = vmax.f32 %v1180_v4, 0.0 }
 0x191   : > { %v992_v57 = vpop.f32.mrf.mxu0  ;;  %v1185_v32 = vpop.f32.mrf.mxu1 }
 0x192   : > { %v1337_v58 = vmax.f32 %v989_v33, 0.0  ;;  %v1339_v41 = vmax.f32 %v1182_v37, 0.0  ;;  %v1456_v20 = vpack.c.bf16 %v1336_v6, %v1332_v0  ;;  %v1458_v56 = vpack.c.bf16 %v1338_v38, %v1334_v19 }
 0x193   : > { %v994_v53 = vpop.f32.mrf.mxu0  ;;  %v1187_v1 = vpop.f32.mrf.mxu1  ;;  %v993_v10 = vadd.f32 %v992_v57, %v3423_v28  ;;  %v1186_v31 = vadd.f32 %v1185_v32, %v3425_v44 }
 0x194   : > { %v1457_v54 = vpack.c.bf16 %v1337_v58, %v1333_v7  ;;  %v1459_v34 = vpack.c.bf16 %v1339_v41, %v1335_v42  ;;  %v995_v27 = vadd.f32 %v994_v53, %v3419_v24  ;;  %v1188_v21 = vadd.f32 %v1187_v1, %v3421_v2 }
 0x195   : > { %v996_v35 = vpop.f32.mrf.mxu0  ;;  %v1189_v9 = vpop.f32.mrf.mxu1  ;;  %v1340_v25 = vmax.f32 %v993_v10, 0.0  ;;  %v1342_v43 = vmax.f32 %v1186_v31, 0.0 }
 0x196   : > { %v997_v45 = vadd.f32 %v996_v35, %v3423_v28  ;;  %v1190_v50 = vadd.f32 %v1189_v9, %v3425_v44  ;;  %1819 = vmatprep.mubr.bf16.mxu0 %v1457_v54  ;;  %1980 = vmatprep.mubr.bf16.mxu1 %v1459_v34  ;;  %v1341_v39 = vmax.f32 %v995_v27, 0.0  ;;  %v1343_v62 = vmax.f32 %v1188_v21, 0.0 }
 0x197   : > { %v998_v51 = vpop.f32.mrf.mxu0  ;;  %v1191_v12 = vpop.f32.mrf.mxu1  ;;  %1820 = vmatmul.mubr.bf16.gmra.mxu0 %v1456_v20  ;;  %1981 = vmatmul.mubr.bf16.gmra.mxu1 %v1458_v56 }
 0x198   : > { %v999_v55 = vadd.f32 %v998_v51, %v3419_v24  ;;  %v1192_v61 = vadd.f32 %v1191_v12, %v3421_v2  ;;  %v1344_v5 = vmax.f32 %v997_v45, 0.0  ;;  %v1346_v15 = vmax.f32 %v1190_v50, 0.0 }
 0x199   : > { %v1002_v23 = vpop.f32.mrf.mxu0  ;;  %v1195_v46 = vpop.f32.mrf.mxu1 }
 0x19a   : > { %v1345_v47 = vmax.f32 %v999_v55, 0.0  ;;  %v1347_v26 = vmax.f32 %v1192_v61, 0.0  ;;  %v1460_v11 = vpack.c.bf16 %v1344_v5, %v1340_v25  ;;  %v1462_v8 = vpack.c.bf16 %v1346_v15, %v1342_v43 }
 0x19b   : > { %v1004_v59 = vpop.f32.mrf.mxu0  ;;  %v1197_v60 = vpop.f32.mrf.mxu1  ;;  %v1003_v52 = vadd.f32 %v1002_v23, %v3423_v28  ;;  %v1196_v22 = vadd.f32 %v1195_v46, %v3425_v44 }
 0x19c   : > { %v1461_v49 = vpack.c.bf16 %v1345_v47, %v1341_v39  ;;  %v1463_v63 = vpack.c.bf16 %v1347_v26, %v1343_v62  ;;  %v1005_v14 = vadd.f32 %v1004_v59, %v3419_v24  ;;  %v1198_v17 = vadd.f32 %v1197_v60, %v3421_v2 }
 0x19d   : > { %v1006_v40 = vpop.f32.mrf.mxu0  ;;  %v1199_v13 = vpop.f32.mrf.mxu1  ;;  %v1348_v7 = vmax.f32 %v1003_v52, 0.0  ;;  %v1350_v42 = vmax.f32 %v1196_v22, 0.0 }
 0x19e   : > { %v1007_v18 = vadd.f32 %v1006_v40, %v3423_v28  ;;  %v1200_v16 = vadd.f32 %v1199_v13, %v3425_v44  ;;  %1827 = vmatprep.mubr.bf16.mxu0 %v1461_v49  ;;  %1988 = vmatprep.mubr.bf16.mxu1 %v1463_v63  ;;  %v1349_v6 = vmax.f32 %v1005_v14, 0.0  ;;  %v1351_v38 = vmax.f32 %v1198_v17, 0.0 }
 0x19f   : > { %v1008_v48 = vpop.f32.mrf.mxu0  ;;  %v1201_v4 = vpop.f32.mrf.mxu1  ;;  %1828 = vmatmul.mubr.bf16.gmra.mxu0 %v1460_v11  ;;  %1989 = vmatmul.mubr.bf16.gmra.mxu1 %v1462_v8 }
 0x1a0   : > { %v1009_v29 = vadd.f32 %v1008_v48, %v3419_v24  ;;  %v1202_v30 = vadd.f32 %v1201_v4, %v3421_v2  ;;  %v1352_v3 = vmax.f32 %v1007_v18, 0.0  ;;  %v1354_v36 = vmax.f32 %v1200_v16, 0.0 }
 0x1a1   : > { %v1012_v33 = vpop.f32.mrf.mxu0  ;;  %v1205_v37 = vpop.f32.mrf.mxu1 }
 0x1a2   : > { %v1353_v57 = vmax.f32 %v1009_v29, 0.0  ;;  %v1355_v32 = vmax.f32 %v1202_v30, 0.0  ;;  %v1464_v53 = vpack.c.bf16 %v1352_v3, %v1348_v7  ;;  %v1466_v1 = vpack.c.bf16 %v1354_v36, %v1350_v42 }
 0x1a3   : > { %v1014_v58 = vpop.f32.mrf.mxu0  ;;  %v1207_v41 = vpop.f32.mrf.mxu1  ;;  %v1013_v9 = vadd.f32 %v1012_v33, %v3423_v28  ;;  %v1206_v21 = vadd.f32 %v1205_v37, %v3425_v44 }
 0x1a4   : > { %v1465_v0 = vpack.c.bf16 %v1353_v57, %v1349_v6  ;;  %v1467_v19 = vpack.c.bf16 %v1355_v32, %v1351_v38  ;;  %v1015_v54 = vadd.f32 %v1014_v58, %v3419_v24  ;;  %v1208_v56 = vadd.f32 %v1207_v41, %v3421_v2 }
 0x1a5   : > { %v1016_v34 = vpop.f32.mrf.mxu0  ;;  %v1209_v20 = vpop.f32.mrf.mxu1  ;;  %v1356_v39 = vmax.f32 %v1013_v9, 0.0  ;;  %v1358_v62 = vmax.f32 %v1206_v21, 0.0 }
 0x1a6   : > { %v1017_v27 = vadd.f32 %v1016_v34, %v3423_v28  ;;  %v1210_v35 = vadd.f32 %v1209_v20, %v3425_v44  ;;  %1835 = vmatprep.mubr.bf16.mxu0 %v1465_v0  ;;  %1996 = vmatprep.mubr.bf16.mxu1 %v1467_v19  ;;  %v1357_v5 = vmax.f32 %v1015_v54, 0.0  ;;  %v1359_v15 = vmax.f32 %v1208_v56, 0.0 }
 0x1a7   : > { %v1018_v45 = vpop.f32.mrf.mxu0  ;;  %v1211_v50 = vpop.f32.mrf.mxu1  ;;  %1836 = vmatmul.mubr.bf16.gmra.mxu0 %v1464_v53  ;;  %1997 = vmatmul.mubr.bf16.gmra.mxu1 %v1466_v1 }
 0x1a8   : > { %v1019_v10 = vadd.f32 %v1018_v45, %v3419_v24  ;;  %v1212_v31 = vadd.f32 %v1211_v50, %v3421_v2  ;;  %v1360_v51 = vmax.f32 %v1017_v27, 0.0  ;;  %v1362_v12 = vmax.f32 %v1210_v35, 0.0 }
 0x1a9   : > { %v1022_v55 = vpop.f32.mrf.mxu0  ;;  %v1215_v61 = vpop.f32.mrf.mxu1 }
 0x1aa   : > { %v1361_v23 = vmax.f32 %v1019_v10, 0.0  ;;  %v1363_v46 = vmax.f32 %v1212_v31, 0.0  ;;  %v1468_v59 = vpack.c.bf16 %v1360_v51, %v1356_v39  ;;  %v1470_v60 = vpack.c.bf16 %v1362_v12, %v1358_v62 }
 0x1ab   : > { %v1024_v47 = vpop.f32.mrf.mxu0  ;;  %v1217_v26 = vpop.f32.mrf.mxu1  ;;  %v1023_v13 = vadd.f32 %v1022_v55, %v3423_v28  ;;  %v1216_v17 = vadd.f32 %v1215_v61, %v3425_v44 }
 0x1ac   : > { %v1469_v25 = vpack.c.bf16 %v1361_v23, %v1357_v5  ;;  %v1471_v43 = vpack.c.bf16 %v1363_v46, %v1359_v15  ;;  %v1025_v49 = vadd.f32 %v1024_v47, %v3419_v24  ;;  %v1218_v8 = vadd.f32 %v1217_v26, %v3421_v2 }
 0x1ad   : > { %v1026_v63 = vpop.f32.mrf.mxu0  ;;  %v1219_v11 = vpop.f32.mrf.mxu1  ;;  %v1364_v6 = vmax.f32 %v1023_v13, 0.0  ;;  %v1366_v38 = vmax.f32 %v1216_v17, 0.0 }
 0x1ae   : > { %v1027_v14 = vadd.f32 %v1026_v63, %v3423_v28  ;;  %v1220_v40 = vadd.f32 %v1219_v11, %v3425_v44  ;;  %1843 = vmatprep.mubr.bf16.mxu0 %v1469_v25  ;;  %2004 = vmatprep.mubr.bf16.mxu1 %v1471_v43  ;;  %v1365_v3 = vmax.f32 %v1025_v49, 0.0  ;;  %v1367_v36 = vmax.f32 %v1218_v8, 0.0 }
 0x1af   : > { %v1028_v18 = vpop.f32.mrf.mxu0  ;;  %v1221_v16 = vpop.f32.mrf.mxu1  ;;  %1844 = vmatmul.mubr.bf16.gmra.mxu0 %v1468_v59  ;;  %2005 = vmatmul.mubr.bf16.gmra.mxu1 %v1470_v60 }
 0x1b0   : > { %v1029_v52 = vadd.f32 %v1028_v18, %v3419_v24  ;;  %v1222_v22 = vadd.f32 %v1221_v16, %v3421_v2  ;;  %v1368_v48 = vmax.f32 %v1027_v14, 0.0  ;;  %v1370_v4 = vmax.f32 %v1220_v40, 0.0 }
 0x1b1   : > { %v1032_v29 = vpop.f32.mrf.mxu0  ;;  %v1225_v30 = vpop.f32.mrf.mxu1 }
 0x1b2   : > { %v1369_v33 = vmax.f32 %v1029_v52, 0.0  ;;  %v1371_v37 = vmax.f32 %v1222_v22, 0.0  ;;  %v1472_v58 = vpack.c.bf16 %v1368_v48, %v1364_v6  ;;  %v1474_v41 = vpack.c.bf16 %v1370_v4, %v1366_v38 }
 0x1b3   : > { %v1034_v57 = vpop.f32.mrf.mxu0  ;;  %v1227_v32 = vpop.f32.mrf.mxu1  ;;  %v1033_v20 = vadd.f32 %v1032_v29, %v3423_v28  ;;  %v1226_v56 = vadd.f32 %v1225_v30, %v3425_v44 }
 0x1b4   : > { %v1473_v7 = vpack.c.bf16 %v1369_v33, %v1365_v3  ;;  %v1475_v42 = vpack.c.bf16 %v1371_v37, %v1367_v36  ;;  %v1035_v0 = vadd.f32 %v1034_v57, %v3419_v24  ;;  %v1228_v1 = vadd.f32 %v1227_v32, %v3421_v2 }
 0x1b5   : > { %v1036_v19 = vpop.f32.mrf.mxu0  ;;  %v1229_v53 = vpop.f32.mrf.mxu1  ;;  %v1372_v5 = vmax.f32 %v1033_v20, 0.0  ;;  %v1374_v15 = vmax.f32 %v1226_v56, 0.0 }
 0x1b6   : > { %v1037_v54 = vadd.f32 %v1036_v19, %v3423_v28  ;;  %v1230_v34 = vadd.f32 %v1229_v53, %v3425_v44  ;;  %1851 = vmatprep.mubr.bf16.mxu0 %v1473_v7  ;;  %2012 = vmatprep.mubr.bf16.mxu1 %v1475_v42  ;;  %v1373_v51 = vmax.f32 %v1035_v0, 0.0  ;;  %v1375_v12 = vmax.f32 %v1228_v1, 0.0 }
 0x1b7   : > { %v1038_v27 = vpop.f32.mrf.mxu0  ;;  %v1231_v35 = vpop.f32.mrf.mxu1  ;;  %1852 = vmatmul.mubr.bf16.gmra.mxu0 %v1472_v58  ;;  %2013 = vmatmul.mubr.bf16.gmra.mxu1 %v1474_v41 }
 0x1b8   : > { %v1039_v9 = vadd.f32 %v1038_v27, %v3419_v24  ;;  %v1232_v21 = vadd.f32 %v1231_v35, %v3421_v2  ;;  %v1376_v45 = vmax.f32 %v1037_v54, 0.0  ;;  %v1378_v50 = vmax.f32 %v1230_v34, 0.0 }
 0x1b9   : > { %v1042_v10 = vpop.f32.mrf.mxu0  ;;  %v1235_v31 = vpop.f32.mrf.mxu1 }
 0x1ba   : > { %v1377_v55 = vmax.f32 %v1039_v9, 0.0  ;;  %v1379_v61 = vmax.f32 %v1232_v21, 0.0  ;;  %v1476_v47 = vpack.c.bf16 %v1376_v45, %v1372_v5  ;;  %v1478_v26 = vpack.c.bf16 %v1378_v50, %v1374_v15 }
 0x1bb   : > { %v1044_v23 = vpop.f32.mrf.mxu0  ;;  %v1237_v46 = vpop.f32.mrf.mxu1  ;;  %v1043_v11 = vadd.f32 %v1042_v10, %v3423_v28  ;;  %v1236_v8 = vadd.f32 %v1235_v31, %v3425_v44 }
 0x1bc   : > { %v1477_v39 = vpack.c.bf16 %v1377_v55, %v1373_v51  ;;  %v1479_v62 = vpack.c.bf16 %v1379_v61, %v1375_v12  ;;  %v1045_v25 = vadd.f32 %v1044_v23, %v3419_v24  ;;  %v1238_v60 = vadd.f32 %v1237_v46, %v3421_v2 }
 0x1bd   : > { %v1046_v43 = vpop.f32.mrf.mxu0  ;;  %v1239_v59 = vpop.f32.mrf.mxu1  ;;  %v1380_v3 = vmax.f32 %v1043_v11, 0.0  ;;  %v1382_v36 = vmax.f32 %v1236_v8, 0.0 }
 0x1be   : > { %v1047_v49 = vadd.f32 %v1046_v43, %v3423_v28  ;;  %v1240_v63 = vadd.f32 %v1239_v59, %v3425_v44  ;;  %1859 = vmatprep.mubr.bf16.mxu0 %v1477_v39  ;;  %2020 = vmatprep.mubr.bf16.mxu1 %v1479_v62  ;;  %v1381_v48 = vmax.f32 %v1045_v25, 0.0  ;;  %v1383_v4 = vmax.f32 %v1238_v60, 0.0 }
 0x1bf   : > { %v1048_v14 = vpop.f32.mrf.mxu0  ;;  %v1241_v40 = vpop.f32.mrf.mxu1  ;;  %1860 = vmatmul.mubr.bf16.gmra.mxu0 %v1476_v47  ;;  %2021 = vmatmul.mubr.bf16.gmra.mxu1 %v1478_v26 }
 0x1c0   : > { %v1049_v13 = vadd.f32 %v1048_v14, %v3419_v24  ;;  %v1242_v17 = vadd.f32 %v1241_v40, %v3421_v2  ;;  %v1384_v18 = vmax.f32 %v1047_v49, 0.0  ;;  %v1386_v16 = vmax.f32 %v1240_v63, 0.0 }
 0x1c1   : > { %v1052_v52 = vpop.f32.mrf.mxu0  ;;  %v1245_v22 = vpop.f32.mrf.mxu1 }
 0x1c2   : > { %v1385_v29 = vmax.f32 %v1049_v13, 0.0  ;;  %v1387_v30 = vmax.f32 %v1242_v17, 0.0  ;;  %v1480_v57 = vpack.c.bf16 %v1384_v18, %v1380_v3  ;;  %v1482_v32 = vpack.c.bf16 %v1386_v16, %v1382_v36 }
 0x1c3   : > { %v1054_v33 = vpop.f32.mrf.mxu0  ;;  %v1247_v37 = vpop.f32.mrf.mxu1  ;;  %v1053_v53 = vadd.f32 %v1052_v52, %v3423_v28  ;;  %v1246_v1 = vadd.f32 %v1245_v22, %v3425_v44 }
 0x1c4   : > { %v1481_v6 = vpack.c.bf16 %v1385_v29, %v1381_v48  ;;  %v1483_v38 = vpack.c.bf16 %v1387_v30, %v1383_v4  ;;  %v1055_v7 = vadd.f32 %v1054_v33, %v3419_v24  ;;  %v1248_v41 = vadd.f32 %v1247_v37, %v3421_v2 }
 0x1c5   : > { %v1056_v42 = vpop.f32.mrf.mxu0  ;;  %v1249_v58 = vpop.f32.mrf.mxu1  ;;  %v1388_v51 = vmax.f32 %v1053_v53, 0.0  ;;  %v1390_v12 = vmax.f32 %v1246_v1, 0.0 }
 0x1c6   : > { %v1057_v0 = vadd.f32 %v1056_v42, %v3423_v28  ;;  %v1250_v19 = vadd.f32 %v1249_v58, %v3425_v44  ;;  %1867 = vmatprep.mubr.bf16.mxu0 %v1481_v6  ;;  %2028 = vmatprep.mubr.bf16.mxu1 %v1483_v38  ;;  %v1389_v45 = vmax.f32 %v1055_v7, 0.0  ;;  %v1391_v50 = vmax.f32 %v1248_v41, 0.0 }
 0x1c7   : > { %v1058_v54 = vpop.f32.mrf.mxu0  ;;  %v1251_v34 = vpop.f32.mrf.mxu1  ;;  %1868 = vmatmul.mubr.bf16.gmra.mxu0 %v1480_v57  ;;  %2029 = vmatmul.mubr.bf16.gmra.mxu1 %v1482_v32 }
 0x1c8   : > { %v1059_v20 = vadd.f32 %v1058_v54, %v3419_v24  ;;  %v1252_v56 = vadd.f32 %v1251_v34, %v3421_v2  ;;  %v1392_v27 = vmax.f32 %v1057_v0, 0.0  ;;  %v1394_v35 = vmax.f32 %v1250_v19, 0.0 }
 0x1c9   : > { %v1062_v9 = vpop.f32.mrf.mxu0  ;;  %v1255_v21 = vpop.f32.mrf.mxu1 }
 0x1ca   : > { %v1393_v10 = vmax.f32 %v1059_v20, 0.0  ;;  %v1395_v31 = vmax.f32 %v1252_v56, 0.0  ;;  %v1484_v23 = vpack.c.bf16 %v1392_v27, %v1388_v51  ;;  %v1486_v46 = vpack.c.bf16 %v1394_v35, %v1390_v12 }
 0x1cb   : > { %v1064_v55 = vpop.f32.mrf.mxu0  ;;  %v1257_v61 = vpop.f32.mrf.mxu1  ;;  %v1063_v59 = vadd.f32 %v1062_v9, %v3423_v28  ;;  %v1256_v60 = vadd.f32 %v1255_v21, %v3425_v44 }
 0x1cc   : > { %v1485_v5 = vpack.c.bf16 %v1393_v10, %v1389_v45  ;;  %v1487_v15 = vpack.c.bf16 %v1395_v31, %v1391_v50  ;;  %v1065_v39 = vadd.f32 %v1064_v55, %v3419_v24  ;;  %v1258_v26 = vadd.f32 %v1257_v61, %v3421_v2 }
 0x1cd   : > { %v1066_v62 = vpop.f32.mrf.mxu0  ;;  %v1259_v47 = vpop.f32.mrf.mxu1  ;;  %v1396_v48 = vmax.f32 %v1063_v59, 0.0  ;;  %v1398_v4 = vmax.f32 %v1256_v60, 0.0 }
 0x1ce   : > { %v1067_v25 = vadd.f32 %v1066_v62, %v3423_v28  ;;  %v1260_v43 = vadd.f32 %v1259_v47, %v3425_v44  ;;  %1875 = vmatprep.mubr.bf16.mxu0 %v1485_v5  ;;  %2036 = vmatprep.mubr.bf16.mxu1 %v1487_v15  ;;  %v1397_v18 = vmax.f32 %v1065_v39, 0.0  ;;  %v1399_v16 = vmax.f32 %v1258_v26, 0.0 }
 0x1cf   : > { %v1068_v49 = vpop.f32.mrf.mxu0  ;;  %v1261_v63 = vpop.f32.mrf.mxu1  ;;  %1876 = vmatmul.mubr.bf16.gmra.mxu0 %v1484_v23  ;;  %2037 = vmatmul.mubr.bf16.gmra.mxu1 %v1486_v46 }
 0x1d0   : > { %v1069_v11 = vadd.f32 %v1068_v49, %v3419_v24  ;;  %v1262_v8 = vadd.f32 %v1261_v63, %v3421_v2  ;;  %v1400_v14 = vmax.f32 %v1067_v25, 0.0  ;;  %v1402_v40 = vmax.f32 %v1260_v43, 0.0 }
 0x1d1   : > { %v1072_v13 = vpop.f32.mrf.mxu0  ;;  %v1265_v17 = vpop.f32.mrf.mxu1 }
 0x1d2   : > { %v1401_v52 = vmax.f32 %v1069_v11, 0.0  ;;  %v1403_v22 = vmax.f32 %v1262_v8, 0.0  ;;  %v1488_v33 = vpack.c.bf16 %v1400_v14, %v1396_v48  ;;  %v1490_v37 = vpack.c.bf16 %v1402_v40, %v1398_v4 }
 0x1d3   : > { %v1074_v29 = vpop.f32.mrf.mxu0  ;;  %v1267_v30 = vpop.f32.mrf.mxu1  ;;  %v1073_v58 = vadd.f32 %v1072_v13, %v3423_v28  ;;  %v1266_v41 = vadd.f32 %v1265_v17, %v3425_v44 }
 0x1d4   : > { %v1489_v3 = vpack.c.bf16 %v1401_v52, %v1397_v18  ;;  %v1491_v36 = vpack.c.bf16 %v1403_v22, %v1399_v16  ;;  %v1075_v6 = vadd.f32 %v1074_v29, %v3419_v24  ;;  %v1268_v32 = vadd.f32 %v1267_v30, %v3421_v2 }
 0x1d5   : > { %v1076_v38 = vpop.f32.mrf.mxu0  ;;  %v1269_v57 = vpop.f32.mrf.mxu1  ;;  %v1404_v45 = vmax.f32 %v1073_v58, 0.0  ;;  %v1406_v50 = vmax.f32 %v1266_v41, 0.0 }
 0x1d6   : > { %v1077_v7 = vadd.f32 %v1076_v38, %v3423_v28  ;;  %v1270_v42 = vadd.f32 %v1269_v57, %v3425_v44  ;;  %1883 = vmatprep.mubr.bf16.mxu0 %v1489_v3  ;;  %2044 = vmatprep.mubr.bf16.mxu1 %v1491_v36  ;;  %v1405_v27 = vmax.f32 %v1075_v6, 0.0  ;;  %v1407_v35 = vmax.f32 %v1268_v32, 0.0 }
 0x1d7   : > { %v1078_v0 = vpop.f32.mrf.mxu0  ;;  %v1271_v19 = vpop.f32.mrf.mxu1  ;;  %1884 = vmatmul.mubr.bf16.gmra.mxu0 %v1488_v33  ;;  %2045 = vmatmul.mubr.bf16.gmra.mxu1 %v1490_v37 }
 0x1d8   : > { %v1079_v53 = vadd.f32 %v1078_v0, %v3419_v24  ;;  %v1272_v1 = vadd.f32 %v1271_v19, %v3421_v2  ;;  %v1408_v54 = vmax.f32 %v1077_v7, 0.0  ;;  %v1410_v34 = vmax.f32 %v1270_v42, 0.0 }
 0x1d9   : > { %v1082_v20 = vpop.f32.mrf.mxu0  ;;  %v1275_v56 = vpop.f32.mrf.mxu1 }
 0x1da   : > { %v1409_v9 = vmax.f32 %v1079_v53, 0.0  ;;  %v1411_v21 = vmax.f32 %v1272_v1, 0.0  ;;  %v1492_v55 = vpack.c.bf16 %v1408_v54, %v1404_v45  ;;  %v1494_v61 = vpack.c.bf16 %v1410_v34, %v1406_v50 }
 0x1db   : > { %v1084_v10 = vpop.f32.mrf.mxu0  ;;  %v1277_v31 = vpop.f32.mrf.mxu1  ;;  %v1083_v47 = vadd.f32 %v1082_v20, %v3423_v28  ;;  %v1276_v26 = vadd.f32 %v1275_v56, %v3425_v44 }
 0x1dc   : > { %v1493_v51 = vpack.c.bf16 %v1409_v9, %v1405_v27  ;;  %v1495_v12 = vpack.c.bf16 %v1411_v21, %v1407_v35  ;;  %v1085_v5 = vadd.f32 %v1084_v10, %v3419_v24  ;;  %v1278_v46 = vadd.f32 %v1277_v31, %v3421_v2 }
 0x1dd   : > { %v1086_v15 = vpop.f32.mrf.mxu0  ;;  %v1279_v23 = vpop.f32.mrf.mxu1  ;;  %v1412_v18 = vmax.f32 %v1083_v47, 0.0  ;;  %v1414_v16 = vmax.f32 %v1276_v26, 0.0 }
 0x1de   : > { %v1087_v39 = vadd.f32 %v1086_v15, %v3423_v28  ;;  %v1280_v62 = vadd.f32 %v1279_v23, %v3425_v44  ;;  %1891 = vmatprep.mubr.bf16.mxu0 %v1493_v51  ;;  %2052 = vmatprep.mubr.bf16.mxu1 %v1495_v12  ;;  %v1413_v14 = vmax.f32 %v1085_v5, 0.0  ;;  %v1415_v40 = vmax.f32 %v1278_v46, 0.0 }
 0x1df   : > { %v1088_v25 = vpop.f32.mrf.mxu0  ;;  %v1281_v43 = vpop.f32.mrf.mxu1  ;;  %1892 = vmatmul.mubr.bf16.gmra.mxu0 %v1492_v55  ;;  %2053 = vmatmul.mubr.bf16.gmra.mxu1 %v1494_v61 }
 0x1e0   : > { %v1089_v59 = vadd.f32 %v1088_v25, %v3419_v24  ;;  %v1282_v60 = vadd.f32 %v1281_v43, %v3421_v2  ;;  %v1416_v49 = vmax.f32 %v1087_v39, 0.0  ;;  %v1418_v63 = vmax.f32 %v1280_v62, 0.0 }
 0x1e1   : > { %v1092_v11 = vpop.f32.mrf.mxu0  ;;  %v1285_v8 = vpop.f32.mrf.mxu1 }
 0x1e2   : > { %v1417_v13 = vmax.f32 %v1089_v59, 0.0  ;;  %v1419_v17 = vmax.f32 %v1282_v60, 0.0  ;;  %v1496_v29 = vpack.c.bf16 %v1416_v49, %v1412_v18  ;;  %v1498_v30 = vpack.c.bf16 %v1418_v63, %v1414_v16 }
 0x1e3   : > { %v1094_v52 = vpop.f32.mrf.mxu0  ;;  %v1287_v22 = vpop.f32.mrf.mxu1  ;;  %v1093_v57 = vadd.f32 %v1092_v11, %v3423_v28  ;;  %v1286_v32 = vadd.f32 %v1285_v8, %v3425_v44 }
 0x1e4   : > { %v1497_v48 = vpack.c.bf16 %v1417_v13, %v1413_v14  ;;  %v1499_v4 = vpack.c.bf16 %v1419_v17, %v1415_v40  ;;  %v1095_v3 = vadd.f32 %v1094_v52, %v3419_v24  ;;  %v1288_v37 = vadd.f32 %v1287_v22, %v3421_v2 }
 0x1e5   : > { %v1096_v36 = vpop.f32.mrf.mxu0  ;;  %v1289_v33 = vpop.f32.mrf.mxu1  ;;  %v1420_v27 = vmax.f32 %v1093_v57, 0.0  ;;  %v1422_v35 = vmax.f32 %v1286_v32, 0.0 }
 0x1e6   : > { %v1097_v6 = vadd.f32 %v1096_v36, %v3423_v28  ;;  %v1290_v38 = vadd.f32 %v1289_v33, %v3425_v44  ;;  %1899 = vmatprep.mubr.bf16.mxu0 %v1497_v48  ;;  %2060 = vmatprep.mubr.bf16.mxu1 %v1499_v4  ;;  %v1421_v54 = vmax.f32 %v1095_v3, 0.0  ;;  %v1423_v34 = vmax.f32 %v1288_v37, 0.0 }
 0x1e7   : > { %v1098_v7 = vpop.f32.mrf.mxu0  ;;  %v1291_v42 = vpop.f32.mrf.mxu1  ;;  %1900 = vmatmul.mubr.bf16.gmra.mxu0 %v1496_v29  ;;  %2061 = vmatmul.mubr.bf16.gmra.mxu1 %v1498_v30 }
 0x1e8   : > { %v1099_v58 = vadd.f32 %v1098_v7, %v3419_v24  ;;  %v1292_v41 = vadd.f32 %v1291_v42, %v3421_v2  ;;  %v1424_v0 = vmax.f32 %v1097_v6, 0.0  ;;  %v1426_v19 = vmax.f32 %v1290_v38, 0.0 }
 0x1e9   : > { %v1102_v53 = vpop.f32.mrf.mxu0  ;;  %v1295_v1 = vpop.f32.mrf.mxu1 }
 0x1ea   : > { %v1425_v20 = vmax.f32 %v1099_v58, 0.0  ;;  %v1427_v56 = vmax.f32 %v1292_v41, 0.0  ;;  %v1500_v10 = vpack.c.bf16 %v1424_v0, %v1420_v27  ;;  %v1502_v31 = vpack.c.bf16 %v1426_v19, %v1422_v35 }
 0x1eb   : > { %v1104_v9 = vpop.f32.mrf.mxu0  ;;  %v1297_v21 = vpop.f32.mrf.mxu1  ;;  %v1103_v23 = vadd.f32 %v1102_v53, %v3423_v28  ;;  %v1296_v46 = vadd.f32 %v1295_v1, %v3425_v44 }
 0x1ec   : > { %v1501_v45 = vpack.c.bf16 %v1425_v20, %v1421_v54  ;;  %v1503_v50 = vpack.c.bf16 %v1427_v56, %v1423_v34  ;;  %v1105_v51 = vadd.f32 %v1104_v9, %v3419_v24  ;;  %v1298_v61 = vadd.f32 %v1297_v21, %v3421_v2 }
 0x1ed   : > { %v1106_v12 = vpop.f32.mrf.mxu0  ;;  %v1299_v55 = vpop.f32.mrf.mxu1  ;;  %v1428_v14 = vmax.f32 %v1103_v23, 0.0  ;;  %v1430_v40 = vmax.f32 %v1296_v46, 0.0 }
 0x1ee   : > { %v1107_v5 = vadd.f32 %v1106_v12, %v3423_v28  ;;  %v1300_v15 = vadd.f32 %v1299_v55, %v3425_v44  ;;  %1907 = vmatprep.mubr.bf16.mxu0 %v1501_v45  ;;  %2068 = vmatprep.mubr.bf16.mxu1 %v1503_v50  ;;  %v1429_v49 = vmax.f32 %v1105_v51, 0.0  ;;  %v1431_v63 = vmax.f32 %v1298_v61, 0.0 }
 0x1ef   : > { %v1108_v39 = vpop.f32.mrf.mxu0  ;;  %v1301_v62 = vpop.f32.mrf.mxu1  ;;  %1908 = vmatmul.mubr.bf16.gmra.mxu0 %v1500_v10  ;;  %2069 = vmatmul.mubr.bf16.gmra.mxu1 %v1502_v31 }
 0x1f0   : > { %v1109_v47 = vadd.f32 %v1108_v39, %v3419_v24  ;;  %v1302_v26 = vadd.f32 %v1301_v62, %v3421_v2  ;;  %v1432_v25 = vmax.f32 %v1107_v5, 0.0  ;;  %v1434_v43 = vmax.f32 %v1300_v15, 0.0 }
 0x1f1   : > { %v1112_v59 = vpop.f32.mrf.mxu0  ;;  %v1305_v60 = vpop.f32.mrf.mxu1 }
 0x1f2   : > { %v1433_v11 = vmax.f32 %v1109_v47, 0.0  ;;  %v1435_v8 = vmax.f32 %v1302_v26, 0.0  ;;  %v1504_v52 = vpack.c.bf16 %v1432_v25, %v1428_v14  ;;  %v1506_v22 = vpack.c.bf16 %v1434_v43, %v1430_v40 }
 0x1f3   : > { %v1114_v13 = vpop.f32.mrf.mxu0  ;;  %v1307_v17 = vpop.f32.mrf.mxu1  ;;  %v1113_v33 = vadd.f32 %v1112_v59, %v3423_v28  ;;  %v1306_v37 = vadd.f32 %v1305_v60, %v3425_v44 }
 0x1f4   : > { %v1505_v18 = vpack.c.bf16 %v1433_v11, %v1429_v49  ;;  %v1507_v16 = vpack.c.bf16 %v1435_v8, %v1431_v63  ;;  %v1115_v48 = vadd.f32 %v1114_v13, %v3419_v24  ;;  %v1308_v30 = vadd.f32 %v1307_v17, %v3421_v2  ;;  %v3559_v11 = vld [vmem:[%s3684_s4] ss:$0 sm:$0xff] }
 0x1f5   : > { %v1116_v4 = vpop.f32.mrf.mxu0  ;;  %v1309_v29 = vpop.f32.mrf.mxu1  ;;  %v1436_v54 = vmax.f32 %v1113_v33, 0.0  ;;  %v1438_v34 = vmax.f32 %v1306_v37, 0.0 }
 0x1f6   : > { %v1117_v3 = vadd.f32 %v1116_v4, %v3423_v28  ;;  %v1310_v36 = vadd.f32 %v1309_v29, %v3425_v44  ;;  %1915 = vmatprep.mubr.bf16.mxu0 %v1505_v18  ;;  %2076 = vmatprep.mubr.bf16.mxu1 %v1507_v16  ;;  %v1437_v0 = vmax.f32 %v1115_v48, 0.0  ;;  %v1439_v19 = vmax.f32 %v1308_v30, 0.0 }
 0x1f7   : > { %v1118_v6 = vpop.f32.mrf.mxu0  ;;  %v1311_v38 = vpop.f32.mrf.mxu1  ;;  %1916 = vmatmul.mubr.bf16.gmra.mxu0 %v1504_v52  ;;  %2077 = vmatmul.mubr.bf16.gmra.mxu1 %v1506_v22 }
 0x1f8   : > { %v1119_v57 = vadd.f32 %v1118_v6, %v3419_v24  ;;  %v1312_v32 = vadd.f32 %v1311_v38, %v3421_v2  ;;  %v1440_v7 = vmax.f32 %v1117_v3, 0.0  ;;  %v1442_v42 = vmax.f32 %v1310_v36, 0.0 }
 0x1f9   : > { %v1122_v58 = vpop.f32.mrf.mxu0  ;;  %v1315_v41 = vpop.f32.mrf.mxu1 }
 0x1fa   : > { %v1441_v53 = vmax.f32 %v1119_v57, 0.0  ;;  %v1443_v1 = vmax.f32 %v1312_v32, 0.0  ;;  %v1508_v9 = vpack.c.bf16 %v1440_v7, %v1436_v54  ;;  %v1510_v21 = vpack.c.bf16 %v1442_v42, %v1438_v34 }
 0x1fb   : > { %v1124_v20 = vpop.f32.mrf.mxu0  ;;  %v1317_v56 = vpop.f32.mrf.mxu1  ;;  %v1123_v55 = vadd.f32 %v1122_v58, %v3423_v28  ;;  %v1316_v61 = vadd.f32 %v1315_v41, %v3425_v44 }
 0x1fc   : > { %v1509_v27 = vpack.c.bf16 %v1441_v53, %v1437_v0  ;;  %v1511_v35 = vpack.c.bf16 %v1443_v1, %v1439_v19  ;;  %v1125_v45 = vadd.f32 %v1124_v20, %v3419_v24  ;;  %v1318_v31 = vadd.f32 %v1317_v56, %v3421_v2 }
 0x1fd   : > { %v1126_v50 = vpop.f32.mrf.mxu0  ;;  %v1319_v10 = vpop.f32.mrf.mxu1  ;;  %v1444_v59 = vmax.f32 %v1123_v55, 0.0  ;;  %v1446_v60 = vmax.f32 %v1316_v61, 0.0 }
 0x1fe   : > { %v1127_v51 = vadd.f32 %v1126_v50, %v3423_v28  ;;  %v1320_v12 = vadd.f32 %v1319_v10, %v3425_v44  ;;  %1923 = vmatprep.mubr.bf16.mxu0 %v1509_v27  ;;  %2084 = vmatprep.mubr.bf16.mxu1 %v1511_v35  ;;  %v1445_v47 = vmax.f32 %v1125_v45, 0.0  ;;  %v1447_v26 = vmax.f32 %v1318_v31, 0.0 }
 0x1ff   : > { %v1128_v5 = vpop.f32.mrf.mxu0  ;;  %v1321_v15 = vpop.f32.mrf.mxu1  ;;  %1924 = vmatmul.mubr.bf16.gmra.mxu0 %v1508_v9  ;;  %2085 = vmatmul.mubr.bf16.gmra.mxu1 %v1510_v21 }
 0x200   : > { %v1129_v23 = vadd.f32 %v1128_v5, %v3419_v24  ;;  %v1322_v46 = vadd.f32 %v1321_v15, %v3421_v2  ;;  %v1448_v39 = vmax.f32 %v1127_v51, 0.0  ;;  %v1450_v62 = vmax.f32 %v1320_v12, 0.0 }
 0x202   : > { %v1449_v25 = vmax.f32 %v1129_v23, 0.0  ;;  %v1451_v43 = vmax.f32 %v1322_v46, 0.0  ;;  %v1512_v49 = vpack.c.bf16 %v1448_v39, %v1444_v59  ;;  %v1514_v63 = vpack.c.bf16 %v1450_v62, %v1446_v60 }
 0x204   : > { %v1513_v28 = vpack.c.bf16 %v1449_v25, %v1445_v47  ;;  %v1515_v44 = vpack.c.bf16 %v1451_v43, %v1447_v26 }
 0x206   : > { %1931 = vmatprep.mubr.bf16.mxu0 %v1513_v28  ;;  %2092 = vmatprep.mubr.bf16.mxu1 %v1515_v44 }
 0x207   : > { %1932 = vmatmul.mubr.bf16.gmra.mxu0 %v1512_v49  ;;  %2093 = vmatmul.mubr.bf16.gmra.mxu1 %v1514_v63 }
 0x24f   : > { %v2303_v24 = vpop.f32.mrf.mxu0  ;;  %v2415_v2 = vpop.f32.mrf.mxu1 }
 0x251   : > { %v2304_v8 = vpop.f32.mrf.mxu0  ;;  %v2416_v14 = vpop.f32.mrf.mxu1 }
 0x252   : > { %v2305_v40 = vadd.f32 %v2304_v8, %v2303_v24  ;;  %v2417_v16 = vadd.f32 %v2416_v14, %v2415_v2 }
 0x253   : > { %v2306_v13 = vpop.f32.mrf.mxu0  ;;  %v2418_v17 = vpop.f32.mrf.mxu1 }
 0x254   : > { %v1814_v18 = vadd.f32 %v2305_v40, %v3559_v11 }
 0x255   : > { %v2307_v52 = vpop.f32.mrf.mxu0  ;;  %v2419_v22 = vpop.f32.mrf.mxu1 }
 0x256   : > { %v1975_v48 = vadd.f32 %v2417_v16, %v1814_v18  ;;  %v2308_v4 = vadd.f32 %v2307_v52, %v2306_v13  ;;  %v2420_v36 = vadd.f32 %v2419_v22, %v2418_v17 }
 0x257   : > { %v2309_v29 = vpop.f32.mrf.mxu0  ;;  %v2421_v30 = vpop.f32.mrf.mxu1 }
 0x258   : > { %2101 = vst [vmem:[%s3564_s7] sm:$0xff] %v1975_v48  ;;  %v1817_v3 = vadd.f32 %v2308_v4, %v3559_v11 }
 0x259   : > { %v2310_v33 = vpop.f32.mrf.mxu0  ;;  %v2422_v37 = vpop.f32.mrf.mxu1 }
 0x25a   : > { %v1978_v6 = vadd.f32 %v2420_v36, %v1817_v3  ;;  %v2311_v38 = vadd.f32 %v2310_v33, %v2309_v29  ;;  %v2423_v42 = vadd.f32 %v2422_v37, %v2421_v30 }
 0x25b   : > { %v2312_v57 = vpop.f32.mrf.mxu0  ;;  %v2424_v32 = vpop.f32.mrf.mxu1 }
 0x25c   : > { %2102 = vst [vmem:[%s3564_s7 + $0x8] sm:$0xff] %v1978_v6  ;;  %v1822_v7 = vadd.f32 %v2311_v38, %v3559_v11 }
 0x25d   : > { %v2313_v58 = vpop.f32.mrf.mxu0  ;;  %v2425_v41 = vpop.f32.mrf.mxu1 }
 0x25e   : > { %v1983_v0 = vadd.f32 %v2423_v42, %v1822_v7  ;;  %v2314_v19 = vadd.f32 %v2313_v58, %v2312_v57  ;;  %v2426_v34 = vadd.f32 %v2425_v41, %v2424_v32 }
 0x25f   : > { %v2315_v53 = vpop.f32.mrf.mxu0  ;;  %v2427_v1 = vpop.f32.mrf.mxu1 }
 0x260   : > { %2103 = vst [vmem:[%s3564_s7 + $0x10] sm:$0xff] %v1983_v0  ;;  %v1825_v54 = vadd.f32 %v2314_v19, %v3559_v11 }
 0x261   : > { %v2316_v20 = vpop.f32.mrf.mxu0  ;;  %v2428_v56 = vpop.f32.mrf.mxu1 }
 0x262   : > { %v1986_v27 = vadd.f32 %v2426_v34, %v1825_v54  ;;  %v2317_v35 = vadd.f32 %v2316_v20, %v2315_v53  ;;  %v2429_v50 = vadd.f32 %v2428_v56, %v2427_v1 }
 0x263   : > { %v2318_v9 = vpop.f32.mrf.mxu0  ;;  %v2430_v21 = vpop.f32.mrf.mxu1 }
 0x264   : > { %2104 = vst [vmem:[%s3564_s7 + $0x18] sm:$0xff] %v1986_v27  ;;  %v1830_v45 = vadd.f32 %v2317_v35, %v3559_v11 }
 0x265   : > { %v2319_v10 = vpop.f32.mrf.mxu0  ;;  %v2431_v31 = vpop.f32.mrf.mxu1 }
 0x266   : > { %v1991_v51 = vadd.f32 %v2429_v50, %v1830_v45  ;;  %v2320_v12 = vadd.f32 %v2319_v10, %v2318_v9  ;;  %v2432_v15 = vadd.f32 %v2431_v31, %v2430_v21 }
 0x267   : > { %v2321_v55 = vpop.f32.mrf.mxu0  ;;  %v2433_v61 = vpop.f32.mrf.mxu1 }
 0x268   : > { %2105 = vst [vmem:[%s3564_s7 + $0x20] sm:$0xff] %v1991_v51  ;;  %v1833_v5 = vadd.f32 %v2320_v12, %v3559_v11 }
 0x269   : > { %v2322_v23 = vpop.f32.mrf.mxu0  ;;  %v2434_v46 = vpop.f32.mrf.mxu1 }
 0x26a   : > { %v1994_v39 = vadd.f32 %v2432_v15, %v1833_v5  ;;  %v2323_v62 = vadd.f32 %v2322_v23, %v2321_v55  ;;  %v2435_v43 = vadd.f32 %v2434_v46, %v2433_v61 }
 0x26b   : > { %v2324_v47 = vpop.f32.mrf.mxu0  ;;  %v2436_v26 = vpop.f32.mrf.mxu1 }
 0x26c   : > { %2106 = vst [vmem:[%s3564_s7 + $0x28] sm:$0xff] %v1994_v39  ;;  %v1838_v25 = vadd.f32 %v2323_v62, %v3559_v11 }
 0x26d   : > { %v2325_v59 = vpop.f32.mrf.mxu0  ;;  %v2437_v60 = vpop.f32.mrf.mxu1 }
 0x26e   : > { %v1999_v28 = vadd.f32 %v2435_v43, %v1838_v25  ;;  %v2326_v44 = vadd.f32 %v2325_v59, %v2324_v47  ;;  %v2438_v2 = vadd.f32 %v2437_v60, %v2436_v26 }
 0x26f   : > { %v2327_v49 = vpop.f32.mrf.mxu0  ;;  %v2439_v63 = vpop.f32.mrf.mxu1 }
 0x270   : > { %2107 = vst [vmem:[%s3564_s7 + $0x30] sm:$0xff] %v1999_v28  ;;  %v1841_v24 = vadd.f32 %v2326_v44, %v3559_v11 }
 0x271   : > { %v2328_v8 = vpop.f32.mrf.mxu0  ;;  %v2440_v14 = vpop.f32.mrf.mxu1 }
 0x272   : > { %v2002_v40 = vadd.f32 %v2438_v2, %v1841_v24  ;;  %v2329_v13 = vadd.f32 %v2328_v8, %v2327_v49  ;;  %v2441_v52 = vadd.f32 %v2440_v14, %v2439_v63 }
 0x273   : > { %v2330_v17 = vpop.f32.mrf.mxu0  ;;  %v2442_v18 = vpop.f32.mrf.mxu1 }
 0x274   : > { %2108 = vst [vmem:[%s3564_s7 + $0x38] sm:$0xff] %v2002_v40  ;;  %v1846_v16 = vadd.f32 %v2329_v13, %v3559_v11 }
 0x275   : > { %v2331_v22 = vpop.f32.mrf.mxu0  ;;  %v2443_v48 = vpop.f32.mrf.mxu1 }
 0x276   : > { %v2007_v4 = vadd.f32 %v2441_v52, %v1846_v16  ;;  %v2332_v29 = vadd.f32 %v2331_v22, %v2330_v17  ;;  %v2444_v33 = vadd.f32 %v2443_v48, %v2442_v18 }
 0x277   : > { %v2333_v30 = vpop.f32.mrf.mxu0  ;;  %v2445_v3 = vpop.f32.mrf.mxu1 }
 0x278   : > { %2109 = vst [vmem:[%s3564_s7 + $0x40] sm:$0xff] %v2007_v4  ;;  %v1849_v36 = vadd.f32 %v2332_v29, %v3559_v11 }
 0x279   : > { %v2334_v37 = vpop.f32.mrf.mxu0  ;;  %v2446_v6 = vpop.f32.mrf.mxu1 }
 0x27a   : > { %v2010_v38 = vadd.f32 %v2444_v33, %v1849_v36  ;;  %v2335_v57 = vadd.f32 %v2334_v37, %v2333_v30  ;;  %v2447_v58 = vadd.f32 %v2446_v6, %v2445_v3 }
 0x27b   : > { %v2336_v32 = vpop.f32.mrf.mxu0  ;;  %v2448_v7 = vpop.f32.mrf.mxu1 }
 0x27c   : > { %2110 = vst [vmem:[%s3564_s7 + $0x48] sm:$0xff] %v2010_v38  ;;  %v1854_v42 = vadd.f32 %v2335_v57, %v3559_v11 }
 0x27d   : > { %v2337_v41 = vpop.f32.mrf.mxu0  ;;  %v2449_v0 = vpop.f32.mrf.mxu1 }
 0x27e   : > { %v2015_v19 = vadd.f32 %v2447_v58, %v1854_v42  ;;  %v2338_v53 = vadd.f32 %v2337_v41, %v2336_v32  ;;  %v2450_v20 = vadd.f32 %v2449_v0, %v2448_v7 }
 0x27f   : > { %v2339_v1 = vpop.f32.mrf.mxu0  ;;  %v2451_v54 = vpop.f32.mrf.mxu1 }
 0x280   : > { %2111 = vst [vmem:[%s3564_s7 + $0x50] sm:$0xff] %v2015_v19  ;;  %v1857_v34 = vadd.f32 %v2338_v53, %v3559_v11 }
 0x281   : > { %v2340_v56 = vpop.f32.mrf.mxu0  ;;  %v2452_v27 = vpop.f32.mrf.mxu1 }
 0x282   : > { %v2018_v35 = vadd.f32 %v2450_v20, %v1857_v34  ;;  %v2341_v9 = vadd.f32 %v2340_v56, %v2339_v1  ;;  %v2453_v10 = vadd.f32 %v2452_v27, %v2451_v54 }
 0x283   : > { %v2342_v21 = vpop.f32.mrf.mxu0  ;;  %v2454_v45 = vpop.f32.mrf.mxu1 }
 0x284   : > { %2112 = vst [vmem:[%s3564_s7 + $0x58] sm:$0xff] %v2018_v35  ;;  %v1862_v50 = vadd.f32 %v2341_v9, %v3559_v11 }
 0x285   : > { %v2343_v31 = vpop.f32.mrf.mxu0  ;;  %v2455_v51 = vpop.f32.mrf.mxu1 }
 0x286   : > { %v2023_v12 = vadd.f32 %v2453_v10, %v1862_v50  ;;  %v2344_v55 = vadd.f32 %v2343_v31, %v2342_v21  ;;  %v2456_v23 = vadd.f32 %v2455_v51, %v2454_v45 }
 0x287   : > { %v2345_v61 = vpop.f32.mrf.mxu0  ;;  %v2457_v5 = vpop.f32.mrf.mxu1 }
 0x288   : > { %2113 = vst [vmem:[%s3564_s7 + $0x60] sm:$0xff] %v2023_v12  ;;  %v1865_v15 = vadd.f32 %v2344_v55, %v3559_v11 }
 0x289   : > { %v2346_v46 = vpop.f32.mrf.mxu0  ;;  %v2458_v39 = vpop.f32.mrf.mxu1 }
 0x28a   : > { %v2026_v62 = vadd.f32 %v2456_v23, %v1865_v15  ;;  %v2347_v47 = vadd.f32 %v2346_v46, %v2345_v61  ;;  %v2459_v59 = vadd.f32 %v2458_v39, %v2457_v5 }
 0x28b   : > { %v2348_v26 = vpop.f32.mrf.mxu0  ;;  %v2460_v25 = vpop.f32.mrf.mxu1 }
 0x28c   : > { %2114 = vst [vmem:[%s3564_s7 + $0x68] sm:$0xff] %v2026_v62  ;;  %v1870_v43 = vadd.f32 %v2347_v47, %v3559_v11 }
 0x28d   : > { %v2349_v60 = vpop.f32.mrf.mxu0  ;;  %v2461_v28 = vpop.f32.mrf.mxu1 }
 0x28e   : > { %v2031_v44 = vadd.f32 %v2459_v59, %v1870_v43  ;;  %v2350_v49 = vadd.f32 %v2349_v60, %v2348_v26  ;;  %v2462_v8 = vadd.f32 %v2461_v28, %v2460_v25 }
 0x28f   : > { %v2351_v63 = vpop.f32.mrf.mxu0  ;;  %v2463_v24 = vpop.f32.mrf.mxu1 }
 0x290   : > { %2115 = vst [vmem:[%s3564_s7 + $0x70] sm:$0xff] %v2031_v44  ;;  %v1873_v2 = vadd.f32 %v2350_v49, %v3559_v11 }
 0x291   : > { %v2352_v14 = vpop.f32.mrf.mxu0  ;;  %v2464_v40 = vpop.f32.mrf.mxu1 }
 0x292   : > { %v2034_v13 = vadd.f32 %v2462_v8, %v1873_v2  ;;  %v2353_v17 = vadd.f32 %v2352_v14, %v2351_v63  ;;  %v2465_v22 = vadd.f32 %v2464_v40, %v2463_v24 }
 0x293   : > { %v2354_v18 = vpop.f32.mrf.mxu0  ;;  %v2466_v16 = vpop.f32.mrf.mxu1 }
 0x294   : > { %2116 = vst [vmem:[%s3564_s7 + $0x78] sm:$0xff] %v2034_v13  ;;  %v1878_v52 = vadd.f32 %v2353_v17, %v3559_v11 }
 0x295   : > { %v2355_v48 = vpop.f32.mrf.mxu0  ;;  %v2467_v4 = vpop.f32.mrf.mxu1 }
 0x296   : > { %v2039_v29 = vadd.f32 %v2465_v22, %v1878_v52  ;;  %v2356_v30 = vadd.f32 %v2355_v48, %v2354_v18  ;;  %v2468_v37 = vadd.f32 %v2467_v4, %v2466_v16 }
 0x297   : > { %v2357_v3 = vpop.f32.mrf.mxu0  ;;  %v2469_v36 = vpop.f32.mrf.mxu1 }
 0x298   : > { %2117 = vst [vmem:[%s3564_s7 + $0x80] sm:$0xff] %v2039_v29  ;;  %v1881_v33 = vadd.f32 %v2356_v30, %v3559_v11 }
 0x299   : > { %v2358_v6 = vpop.f32.mrf.mxu0  ;;  %v2470_v38 = vpop.f32.mrf.mxu1 }
 0x29a   : > { %v2042_v57 = vadd.f32 %v2468_v37, %v1881_v33  ;;  %v2359_v32 = vadd.f32 %v2358_v6, %v2357_v3  ;;  %v2471_v41 = vadd.f32 %v2470_v38, %v2469_v36 }
 0x29b   : > { %v2360_v7 = vpop.f32.mrf.mxu0  ;;  %v2472_v42 = vpop.f32.mrf.mxu1 }
 0x29c   : > { %2118 = vst [vmem:[%s3564_s7 + $0x88] sm:$0xff] %v2042_v57  ;;  %v1886_v58 = vadd.f32 %v2359_v32, %v3559_v11 }
 0x29d   : > { %v2361_v0 = vpop.f32.mrf.mxu0  ;;  %v2473_v19 = vpop.f32.mrf.mxu1 }
 0x29e   : > { %v2047_v53 = vadd.f32 %v2471_v41, %v1886_v58  ;;  %v2362_v1 = vadd.f32 %v2361_v0, %v2360_v7  ;;  %v2474_v56 = vadd.f32 %v2473_v19, %v2472_v42 }
 0x29f   : > { %v2363_v54 = vpop.f32.mrf.mxu0  ;;  %v2475_v34 = vpop.f32.mrf.mxu1 }
 0x2a0   : > { %2119 = vst [vmem:[%s3564_s7 + $0x90] sm:$0xff] %v2047_v53  ;;  %v1889_v20 = vadd.f32 %v2362_v1, %v3559_v11 }
 0x2a1   : > { %v2364_v27 = vpop.f32.mrf.mxu0  ;;  %v2476_v35 = vpop.f32.mrf.mxu1 }
 0x2a2   : > { %v2050_v9 = vadd.f32 %v2474_v56, %v1889_v20  ;;  %v2365_v21 = vadd.f32 %v2364_v27, %v2363_v54  ;;  %v2477_v31 = vadd.f32 %v2476_v35, %v2475_v34 }
 0x2a3   : > { %v2366_v45 = vpop.f32.mrf.mxu0  ;;  %v2478_v50 = vpop.f32.mrf.mxu1 }
 0x2a4   : > { %2120 = vst [vmem:[%s3564_s7 + $0x98] sm:$0xff] %v2050_v9  ;;  %v1894_v10 = vadd.f32 %v2365_v21, %v3559_v11 }
 0x2a5   : > { %v2367_v51 = vpop.f32.mrf.mxu0  ;;  %v2479_v12 = vpop.f32.mrf.mxu1 }
 0x2a6   : > { %v2055_v55 = vadd.f32 %v2477_v31, %v1894_v10  ;;  %v2368_v61 = vadd.f32 %v2367_v51, %v2366_v45  ;;  %v2480_v46 = vadd.f32 %v2479_v12, %v2478_v50 }
 0x2a7   : > { %v2369_v5 = vpop.f32.mrf.mxu0  ;;  %v2481_v15 = vpop.f32.mrf.mxu1 }
 0x2a8   : > { %2121 = vst [vmem:[%s3564_s7 + $0xa0] sm:$0xff] %v2055_v55  ;;  %v1897_v23 = vadd.f32 %v2368_v61, %v3559_v11 }
 0x2a9   : > { %v2370_v39 = vpop.f32.mrf.mxu0  ;;  %v2482_v62 = vpop.f32.mrf.mxu1 }
 0x2aa   : > { %v2058_v47 = vadd.f32 %v2480_v46, %v1897_v23  ;;  %v2371_v26 = vadd.f32 %v2370_v39, %v2369_v5  ;;  %v2483_v60 = vadd.f32 %v2482_v62, %v2481_v15 }
 0x2ab   : > { %v2372_v25 = vpop.f32.mrf.mxu0  ;;  %v2484_v43 = vpop.f32.mrf.mxu1 }
 0x2ac   : > { %2122 = vst [vmem:[%s3564_s7 + $0xa8] sm:$0xff] %v2058_v47  ;;  %v1902_v59 = vadd.f32 %v2371_v26, %v3559_v11 }
 0x2ad   : > { %v2373_v28 = vpop.f32.mrf.mxu0  ;;  %v2485_v44 = vpop.f32.mrf.mxu1 }
 0x2ae   : > { %v2063_v49 = vadd.f32 %v2483_v60, %v1902_v59  ;;  %v2374_v63 = vadd.f32 %v2373_v28, %v2372_v25  ;;  %v2486_v14 = vadd.f32 %v2485_v44, %v2484_v43 }
 0x2af   : > { %v2375_v24 = vpop.f32.mrf.mxu0  ;;  %v2487_v2 = vpop.f32.mrf.mxu1 }
 0x2b0   : > { %2123 = vst [vmem:[%s3564_s7 + $0xb0] sm:$0xff] %v2063_v49  ;;  %v1905_v8 = vadd.f32 %v2374_v63, %v3559_v11 }
 0x2b1   : > { %v2376_v40 = vpop.f32.mrf.mxu0  ;;  %v2488_v13 = vpop.f32.mrf.mxu1 }
 0x2b2   : > { %v2066_v17 = vadd.f32 %v2486_v14, %v1905_v8  ;;  %v2377_v18 = vadd.f32 %v2376_v40, %v2375_v24  ;;  %v2489_v48 = vadd.f32 %v2488_v13, %v2487_v2 }
 0x2b3   : > { %v2378_v16 = vpop.f32.mrf.mxu0  ;;  %v2490_v52 = vpop.f32.mrf.mxu1 }
 0x2b4   : > { %2124 = vst [vmem:[%s3564_s7 + $0xb8] sm:$0xff] %v2066_v17  ;;  %v1910_v22 = vadd.f32 %v2377_v18, %v3559_v11 }
 0x2b5   : > { %v2379_v4 = vpop.f32.mrf.mxu0  ;;  %v2491_v29 = vpop.f32.mrf.mxu1 }
 0x2b6   : > { %v2071_v30 = vadd.f32 %v2489_v48, %v1910_v22  ;;  %v2380_v3 = vadd.f32 %v2379_v4, %v2378_v16  ;;  %v2492_v6 = vadd.f32 %v2491_v29, %v2490_v52 }
 0x2b7   : > { %v2381_v36 = vpop.f32.mrf.mxu0  ;;  %v2493_v33 = vpop.f32.mrf.mxu1 }
 0x2b8   : > { %2125 = vst [vmem:[%s3564_s7 + $0xc0] sm:$0xff] %v2071_v30  ;;  %v1913_v37 = vadd.f32 %v2380_v3, %v3559_v11 }
 0x2b9   : > { %v2382_v38 = vpop.f32.mrf.mxu0  ;;  %v2494_v57 = vpop.f32.mrf.mxu1 }
 0x2ba   : > { %v2074_v32 = vadd.f32 %v2492_v6, %v1913_v37  ;;  %v2383_v7 = vadd.f32 %v2382_v38, %v2381_v36  ;;  %v2495_v0 = vadd.f32 %v2494_v57, %v2493_v33 }
 0x2bb   : > { %v2384_v42 = vpop.f32.mrf.mxu0  ;;  %v2496_v58 = vpop.f32.mrf.mxu1 }
 0x2bc   : > { %2126 = vst [vmem:[%s3564_s7 + $0xc8] sm:$0xff] %v2074_v32  ;;  %v1918_v41 = vadd.f32 %v2383_v7, %v3559_v11 }
 0x2bd   : > { %v2385_v19 = vpop.f32.mrf.mxu0  ;;  %v2497_v53 = vpop.f32.mrf.mxu1 }
 0x2be   : > { %v2079_v1 = vadd.f32 %v2495_v0, %v1918_v41  ;;  %v2386_v54 = vadd.f32 %v2385_v19, %v2384_v42  ;;  %v2498_v27 = vadd.f32 %v2497_v53, %v2496_v58 }
 0x2bf   : > { %v2387_v34 = vpop.f32.mrf.mxu0  ;;  %v2499_v20 = vpop.f32.mrf.mxu1 }
 0x2c0   : > { %2127 = vst [vmem:[%s3564_s7 + $0xd0] sm:$0xff] %v2079_v1  ;;  %v1921_v56 = vadd.f32 %v2386_v54, %v3559_v11 }
 0x2c1   : > { %v2388_v35 = vpop.f32.mrf.mxu0  ;;  %v2500_v9 = vpop.f32.mrf.mxu1 }
 0x2c2   : > { %v2082_v21 = vadd.f32 %v2498_v27, %v1921_v56  ;;  %v2389_v45 = vadd.f32 %v2388_v35, %v2387_v34  ;;  %v2501_v51 = vadd.f32 %v2500_v9, %v2499_v20 }
 0x2c3   : > { %v2390_v50 = vpop.f32.mrf.mxu0  ;;  %v2502_v10 = vpop.f32.mrf.mxu1 }
 0x2c4   : > { %2128 = vst [vmem:[%s3564_s7 + $0xd8] sm:$0xff] %v2082_v21  ;;  %v1926_v31 = vadd.f32 %v2389_v45, %v3559_v11 }
 0x2c5   : > { %v2391_v12 = vpop.f32.mrf.mxu0  ;;  %v2503_v55 = vpop.f32.mrf.mxu1 }
 0x2c6   : > { %v2087_v61 = vadd.f32 %v2501_v51, %v1926_v31  ;;  %v2392_v5 = vadd.f32 %v2391_v12, %v2390_v50  ;;  %v2504_v39 = vadd.f32 %v2503_v55, %v2502_v10 }
 0x2c7   : > { %v2393_v15 = vpop.f32.mrf.mxu0  ;;  %v2505_v23 = vpop.f32.mrf.mxu1 }
 0x2c8   : > { %2129 = vst [vmem:[%s3564_s7 + $0xe0] sm:$0xff] %v2087_v61  ;;  %v1929_v46 = vadd.f32 %v2392_v5, %v3559_v11 }
 0x2c9   : > { %v2394_v62 = vpop.f32.mrf.mxu0  ;;  %v2506_v47 = vpop.f32.mrf.mxu1 }
 0x2ca   : > { %v2090_v26 = vadd.f32 %v2504_v39, %v1929_v46  ;;  %v2395_v25 = vadd.f32 %v2394_v62, %v2393_v15  ;;  %v2507_v28 = vadd.f32 %v2506_v47, %v2505_v23 }
 0x2cb   : > { %v2396_v43 = vpop.f32.mrf.mxu0  ;;  %v2508_v59 = vpop.f32.mrf.mxu1 }
 0x2cc   : > { %2130 = vst [vmem:[%s3564_s7 + $0xe8] sm:$0xff] %v2090_v26  ;;  %v1934_v60 = vadd.f32 %v2395_v25, %v3559_v11 }
 0x2cd   : > { %v2397_v44 = vpop.f32.mrf.mxu0  ;;  %v2509_v49 = vpop.f32.mrf.mxu1 }
 0x2ce   : > { %v2095_v63 = vadd.f32 %v2507_v28, %v1934_v60  ;;  %v2398_v24 = vadd.f32 %v2397_v44, %v2396_v43  ;;  %v2510_v8 = vadd.f32 %v2509_v49, %v2508_v59 }
 0x2d0   : > { %2131 = vst [vmem:[%s3564_s7 + $0xf0] sm:$0xff] %v2095_v63  ;;  %v1937_v2 = vadd.f32 %v2398_v24, %v3559_v11 }
 0x2d2   : > { %v2098_v14 = vadd.f32 %v2510_v8, %v1937_v2 }
 0x2d4   : > { %2132 = vst [vmem:[%s3564_s7 + $0xf8] sm:$0xff] %v2098_v14 }
 0x2d5   : > { %2716 = shalt.err (!%p2713_p3)
}
 0x2d6   : > { %s2717_s23 = scalar_lea.hbm %s3633_s13, 4096  ;;  %s2721_s26 = scalar_lea.hbm %s3685_s5, 8192 }
 0x2d7   : > { %p2718_p4 = scmp.ne.s32.totalorder %s3633_s13, %s2717_s23  ;;  %p2722_p9 = scmp.lt.s32.totalorder %s3633_s13, %s3685_s5 }
 0x2d8   : > { %p2723_p10 = scmp.lt.s32.totalorder %s2721_s26, %s2717_s23 }
 0x2d9   : > { %p2719_p7 = pnand %p2718_p4, %p2837_p5 }
 0x2da   : > { %p2724_p11 = por %p2723_p10, %p2722_p9 }
 0x2db   : > { %p2720_p8 = pneg %p2719_p7 }
 0x2dd   : > { %p2725_p12 = pnand %p2724_p11, %p2720_p8 }
 0x2df   : > { %2728 = shalt.err (!%p2725_p12)
}
 0x2e0   : > { %s2767_s7 = smov 128   ;;  %s2768_s8 = smov 8  }
 0x2e1   : > { %2511 = dma.vmem_to_hbm [thread:$0]  (%p2837_p5), %s3635_s10, 4096, %s3633_s13, %s3640_s14, %s2767_s7, %s2767_s7, %s2768_s8  }
 0x2e2 PF: > { %p2517_p13 = scmp.ge.s32.totalorder %s2763_s21, 2  ;;  %s2162_s11 = sand.u32 1, %s2751_s18  }
 0x2e3   : > { %s2163_s12 = scalar_lea.sflag [#allocation3], %s2162_s11 }
 0x2e4   : > { %p2514_p0 = pnand %p2517_p13, %p2841_p6 }
 0x2e6   : > { %p2515_p1 = pneg %p2514_p0 }
 0x2e8   : > { %2746 = dma.done.wait (%p2515_p1), %s2163_s12, 4096  }
 0x2e9   : > { %2748 = vsyncadd (%p2515_p1), %s2163_s12, 4294963200  ;;  %p15_p2 = scmp.ge.s32.totalorder %s2824_s24, 4   ;;  %s3688_s18 = smov %s2755_s19 }
 0x2ea   : > { %s3689_s19 = smov %s2759_s20  ;;  %s3690_s20 = smov %s2835_s27 }
 0x2eb   : > { %s3691_s21 = smov %s2824_s24  ;;  %17 = sbr.rel (!%p15_p2) target bundleno = 3 (0x3), region = 75 }
 0x2f0   :  { %2168 = vsyncpa [#allocation3], 1 }
 0x2f1   :  { %2170 = vsyncpa [#allocation3 + $0x1], 1 }

</bundles_post_ra>
